<compile_context>
chip_gen: v7x
topology: tpu7x:2x2x1
jax: 0.10.0
libtpu: 0.0.40
codegen_flags: <defaults>
</compile_context>

<pallas_src>
import functools
from types import SimpleNamespace

import jax
import jax.numpy as jnp
from jax import lax
from jax.experimental import pallas as pl
from jax.experimental.pallas import tpu as pltpu

LANES = 128          # TPU lane width
SUBL = 8             # f32 sublane tile
MAX_SUB_CE = 512     # sublanes/block for logits-bearing kernels (64K px/block)
MAX_SUB_FLAT = 2048  # sublanes/block for C-free streaming kernels
_VMEM_LIMIT = 32 * 1024 * 1024


# --------------------------------------------------------------------------
# tiling / layout helpers (wrapper side -- no dtype casts of large tensors)
# --------------------------------------------------------------------------
def _tile_plan(num_pixels, n_batch, max_sub):
    """Pad pixel count to ROWS_PAD*128 and pick a sublane block size."""
    rows = -(-num_pixels // LANES)
    rows8 = -(-rows // SUBL) * SUBL
    sub = min(max_sub, rows8)
    if n_batch == 1 and rows8 >= 2 * SUBL:
        # keep >= 2 grid steps so both v7x TensorCores get work
        sub = min(sub, max(SUBL, (rows8 // 2) // SUBL * SUBL))
    rows_pad = -(-rows8 // sub) * sub
    return rows_pad, sub


def _prep_logits(score_nchw, rows_pad):
    """(N,C,H,W) -> (N,C,ROWS_PAD,128), native dtype, pad only if needed."""
    N, C, H, W = score_nchw.shape
    hw = H * W
    x = score_nchw.reshape(N, C, hw)
    pad = rows_pad * LANES - hw
    if pad:
        x = jnp.pad(x, ((0, 0), (0, 0), (0, pad)))
    return x.reshape(N, C, rows_pad, LANES)


def _prep_target(target_nhw, ignore_label, rows_pad):
    """(N,H,W) int -> (N,ROWS_PAD,128) int32, padded with ignore_label."""
    N = target_nhw.shape[0]
    hw = target_nhw.shape[1] * target_nhw.shape[2]
    t = target_nhw.reshape(N, hw)
    if t.dtype != jnp.int32:
        t = t.astype(jnp.int32)
    pad = rows_pad * LANES - hw
    if pad:
        t = jnp.pad(t, ((0, 0), (0, pad)), constant_values=ignore_label)
    return t.reshape(N, rows_pad, LANES)


def _prep_plane(x_nhw, rows_pad, pad_value):
    """(N,H,W) per-pixel plane -> (N,ROWS_PAD,128), native dtype (bool->int8)."""
    N = x_nhw.shape[0]
    hw = x_nhw.shape[1] * x_nhw.shape[2]
    x = x_nhw.reshape(N, hw)
    if x.dtype == jnp.bool_:
        x = x.astype(jnp.int8)
    pad = rows_pad * LANES - hw
    if pad:
        x = jnp.pad(x, ((0, 0), (0, pad)), constant_values=pad_value)
    return x.reshape(N, rows_pad, LANES)


# --------------------------------------------------------------------------
# in-kernel helpers: pairwise-tree reductions + softmax/one-hot-gather
# --------------------------------------------------------------------------
def _tree(vals, op):
    vals = list(vals)
    while len(vals) > 1:
        nxt = [op(vals[i], vals[i + 1]) for i in range(0, len(vals) - 1, 2)]
        if len(vals) % 2:
            nxt.append(vals[-1])
        vals = nxt
    return vals[0]


def _fold(v):
    """(S,128) -> (8,128): pairwise-tree sum of 8-row groups (pure VPU adds)."""
    s = v.shape[0]
    groups = [v[i * SUBL:(i + 1) * SUBL, :] for i in range(s // SUBL)]
    return _tree(groups, lambda a, b: a + b)


def _softmax_gather(score_ref, tgt, ignore_label):
    """score_ref block (1,C,S,128) (any dtype), tgt (S,128) i32.

    Returns (lse_shift, d_t, valid) with d_t = logit[target]-max and
    lse_shift = log(sum exp(logit-max)), so loss = lse_shift - d_t and
    pred = exp(d_t - lse_shift).  Per-class slices are re-loaded from VMEM to
    keep live temporaries small (loads are cheap; 3 vld slots/cycle).
    """
    C = score_ref.shape[1]
    m = score_ref[0, 0].astype(jnp.float32)
    for c in range(1, C):
        m = jnp.maximum(m, score_ref[0, c].astype(jnp.float32))
    valid = tgt != ignore_label
    t = jnp.where(valid, tgt, 0)                  # torch tmp_target: ignore -> 0
    d0 = score_ref[0, 0].astype(jnp.float32) - m
    s_exp = jnp.exp(d0)
    d_t = d0
    for c in range(1, C):
        d = score_ref[0, c].astype(jnp.float32) - m
        s_exp = s_exp + jnp.exp(d)
        d_t = jnp.where(t == c, d, d_t)           # one-hot gather, VPU selects
    lse_shift = jnp.log(s_exp)
    return lse_shift, d_t, valid


# --------------------------------------------------------------------------
# Kernel C: plain-CE partials -> per-tile [sum(loss*valid), count(valid)]
# --------------------------------------------------------------------------
def _ce_partial_kernel(score_ref, tgt_ref, part_ref, *, ignore_label):
    lse, d_t, valid = _softmax_gather(score_ref, tgt_ref[0], ignore_label)
    loss = jnp.where(valid, lse - d_t, 0.0)
    part_ref[0, 0, 0] = _fold(loss)
    part_ref[0, 0, 1] = _fold(valid.astype(jnp.float32))


def _ce_sums(score, target, ignore_label):
    N, C, H, W = score.shape
    hw = H * W
    rows_pad, sub = _tile_plan(hw, N, MAX_SUB_CE)
    x = _prep_logits(score, rows_pad)
    t = _prep_target(target, ignore_label, rows_pad)
    n_rt = rows_pad // sub
    parts = pl.pallas_call(
        functools.partial(_ce_partial_kernel, ignore_label=ignore_label),
        out_shape=jax.ShapeDtypeStruct((N, n_rt, 2, SUBL, LANES), jnp.float32),
        grid=(N, n_rt),
        in_specs=[pl.BlockSpec((1, C, sub, LANES), lambda n, r: (n, 0, r, 0)),
                  pl.BlockSpec((1, sub, LANES), lambda n, r: (n, r, 0))],
        out_specs=pl.BlockSpec((1, 1, 2, SUBL, LANES),
                               lambda n, r: (n, r, 0, 0, 0)),
        compiler_params=pltpu.CompilerParams(
            dimension_semantics=("parallel", "parallel"),
            vmem_limit_bytes=_VMEM_LIMIT),
    )(x, t)
    s = jnp.sum(parts[:, :, 0])
    c = jnp.sum(parts[:, :, 1].astype(jnp.int32))   # exact integer count
    return s, c, N * hw


# --------------------------------------------------------------------------
# Kernel A (single target): pred (sentinel 2.0) + OHEM partials
# --------------------------------------------------------------------------
def _ohem_pred_kernel(score_ref, tgt_ref, pred_ref, part_ref,
                      *, ignore_label, thresh):
    lse, d_t, valid = _softmax_gather(score_ref, tgt_ref[0], ignore_label)
    loss_raw = lse - d_t
    pred_raw = jnp.exp(d_t - lse)
    pred = jnp.where(valid, pred_raw, 2.0)        # sentinel > any softmax prob
    pred_ref[0] = pred
    thr = jnp.float32(thresh)
    lt = pred < thr
    part_ref[0, 0, 0] = _fold(jnp.where(lt, loss_raw, 0.0))
    part_ref[0, 0, 1] = _fold(lt.astype(jnp.float32))
    part_ref[0, 0, 2] = _fold((pred <= thr).astype(jnp.float32))
    part_ref[0, 0, 3] = _fold(valid.astype(jnp.float32))


def _ohem_single(score, target, ignore_label, thresh, min_kept):
    N, C, H, W = score.shape
    hw = H * W
    rows_pad, sub = _tile_plan(hw, N, MAX_SUB_CE)
    x = _prep_logits(score, rows_pad)
    t = _prep_target(target, ignore_label, rows_pad)
    n_rt = rows_pad // sub
    pred, parts = pl.pallas_call(
        functools.partial(_ohem_pred_kernel, ignore_label=ignore_label,
                          thresh=thresh),
        out_shape=(jax.ShapeDtypeStruct((N, rows_pad, LANES), jnp.float32),
                   jax.ShapeDtypeStruct((N, n_rt, 4, SUBL, LANES), jnp.float32)),
        grid=(N, n_rt),
        in_specs=[pl.BlockSpec((1, C, sub, LANES), lambda n, r: (n, 0, r, 0)),
                  pl.BlockSpec((1, sub, LANES), lambda n, r: (n, r, 0))],
        out_specs=(pl.BlockSpec((1, sub, LANES), lambda n, r: (n, r, 0)),
                   pl.BlockSpec((1, 1, 4, SUBL, LANES),
                                lambda n, r: (n, r, 0, 0, 0))),
        compiler_params=pltpu.CompilerParams(
            dimension_semantics=("parallel", "parallel"),
            vmem_limit_bytes=_VMEM_LIMIT),
    )(x, t)
    fsum = lambda i: jnp.sum(parts[:, :, i])
    isum = lambda i: jnp.sum(parts[:, :, i].astype(jnp.int32))
    return _ohem_mean(pred, fsum(0), isum(1), isum(2), isum(3),
                      thresh, min_kept, sub)


# --------------------------------------------------------------------------
# Kernel A' (fused main head): dual-target OHEM partials + weighted-BCE
#            partials; bd_label gate (sigmoid>0.8) computed in-kernel.
# --------------------------------------------------------------------------
_NPLANES = 12  # [lab: sum_lt,cnt_lt,cnt_le,cnt_valid] [bd: same 4] [bce: 4]


def _fused_main_kernel(score_ref, lab_ref, d_ref, bd_ref,
                       pred_lab_ref, pred_bd_ref, part_ref,
                       *, ignore_label, thresh):
    lse, d_t, valid = _softmax_gather(score_ref, lab_ref[0], ignore_label)
    loss_raw = lse - d_t
    pred_raw = jnp.exp(d_t - lse)

    d_logit = d_ref[0].astype(jnp.float32)
    gate = (1.0 / (1.0 + jnp.exp(-d_logit))) > 0.8      # sigmoid > 0.8
    valid_bd = jnp.logical_and(valid, gate)             # bd_label != ignore

    pred_lab = jnp.where(valid, pred_raw, 2.0)
    pred_bd = jnp.where(valid_bd, pred_raw, 2.0)
    pred_lab_ref[0] = pred_lab
    pred_bd_ref[0] = pred_bd

    thr = jnp.float32(thresh)
    for base, p in ((0, pred_lab), (4, pred_bd)):
        lt = p < thr                                     # sentinel never kept
        part_ref[0, 0, base + 0] = _fold(jnp.where(lt, loss_raw, 0.0))
        part_ref[0, 0, base + 1] = _fold(lt.astype(jnp.float32))
        part_ref[0, 0, base + 2] = _fold((p <= thr).astype(jnp.float32))
    part_ref[0, 0, 3] = _fold(valid.astype(jnp.float32))
    part_ref[0, 0, 7] = _fold(valid_bd.astype(jnp.float32))

    # class-balanced BCE-with-logits partials of the boundary head vs bd_gt
    t_bd = bd_ref[0].astype(jnp.float32)                 # {0,1}, pad = -1
    pos = (t_bd == 1.0).astype(jnp.float32)
    neg = (t_bd == 0.0).astype(jnp.float32)
    bce = (jnp.maximum(d_logit, 0.0) - d_logit * t_bd +
           jnp.log(1.0 + jnp.exp(-jnp.abs(d_logit))))    # stable, finite at pads
    part_ref[0, 0, 8] = _fold(bce * pos)
    part_ref[0, 0, 9] = _fold(bce * neg)
    part_ref[0, 0, 10] = _fold(pos)
    part_ref[0, 0, 11] = _fold(neg)


def _fused_main_head(score, labels, d_logits_nhw, bd_gt, ignore_label,
                     thresh, min_kept):
    """Returns (ohem_loss_labels, ohem_loss_bd_label, weighted_bce_mean)."""
    N, C, H, W = score.shape
    hw = H * W
    rows_pad, sub = _tile_plan(hw, N, MAX_SUB_CE)
    x = _prep_logits(score, rows_pad)
    t = _prep_target(labels, ignore_label, rows_pad)
    d = _prep_plane(d_logits_nhw, rows_pad, 0)
    b = _prep_plane(bd_gt, rows_pad, -1)                 # pad: neither pos nor neg
    n_rt = rows_pad // sub

    pred_lab, pred_bd, parts = pl.pallas_call(
        functools.partial(_fused_main_kernel, ignore_label=ignore_label,
                          thresh=thresh),
        out_shape=(jax.ShapeDtypeStruct((N, rows_pad, LANES), jnp.float32),
                   jax.ShapeDtypeStruct((N, rows_pad, LANES), jnp.float32),
                   jax.ShapeDtypeStruct((N, n_rt, _NPLANES, SUBL, LANES),
                                        jnp.float32)),
        grid=(N, n_rt),
        in_specs=[pl.BlockSpec((1, C, sub, LANES), lambda n, r: (n, 0, r, 0)),
                  pl.BlockSpec((1, sub, LANES), lambda n, r: (n, r, 0)),
                  pl.BlockSpec((1, sub, LANES), lambda n, r: (n, r, 0)),
                  pl.BlockSpec((1, sub, LANES), lambda n, r: (n, r, 0))],
        out_specs=(pl.BlockSpec((1, sub, LANES), lambda n, r: (n, r, 0)),
                   pl.BlockSpec((1, sub, LANES), lambda n, r: (n, r, 0)),
                   pl.BlockSpec((1, 1, _NPLANES, SUBL, LANES),
                                lambda n, r: (n, r, 0, 0, 0))),
        compiler_params=pltpu.CompilerParams(
            dimension_semantics=("parallel", "parallel"),
            vmem_limit_bytes=_VMEM_LIMIT),
    )(x, t, d, b)

    fsum = lambda i: jnp.sum(parts[:, :, i])
    isum = lambda i: jnp.sum(parts[:, :, i].astype(jnp.int32))

    ohem_lab = _ohem_mean(pred_lab, fsum(0), isum(1), isum(2), isum(3),
                          thresh, min_kept, sub)
    ohem_bd = _ohem_mean(pred_bd, fsum(4), isum(5), isum(6), isum(7),
                         thresh, min_kept, sub)

    s_pos, s_neg = fsum(8), fsum(9)
    n_pos = isum(10).astype(jnp.float32)
    n_neg = isum(11).astype(jnp.float32)
    sum_num = n_pos + n_neg
    bce = jnp.where(sum_num > 0,
                    (n_neg * s_pos + n_pos * s_neg) / sum_num,
                    0.0) / jnp.float32(N * hw)           # reduction='mean'
    return ohem_lab, ohem_bd, bce


# --------------------------------------------------------------------------
# Kernel B (slow path only): masked sum with dynamic threshold; loss is
#           recomputed as -log(pred) in-kernel (EUP slot), no loss slab.
# --------------------------------------------------------------------------
def _ohem_sum_kernel(thr_ref, pred_ref, part_ref):
    thr = thr_ref[0]
    p = pred_ref[0]
    keep = p < thr                                       # sentinel 2.0 never kept
    loss = -jnp.log(jnp.maximum(p, 1e-37))               # guard pred underflow
    part_ref[0, 0, 0] = _fold(jnp.where(keep, loss, 0.0))
    part_ref[0, 0, 1] = _fold(keep.astype(jnp.float32))


def _ohem_masked_sum(pred, threshold, sub_a):
    N, rows_pad, _ = pred.shape
    sub_b = sub_a
    for k in (8, 4, 2):                                  # larger C-free blocks
        if sub_a * k <= MAX_SUB_FLAT and rows_pad % (sub_a * k) == 0:
            sub_b = sub_a * k
            break
    n_rt = rows_pad // sub_b
    thr = jnp.asarray(threshold, jnp.float32).reshape(1)
    parts = pl.pallas_call(
        _ohem_sum_kernel,
        out_shape=jax.ShapeDtypeStruct((N, n_rt, 2, SUBL, LANES), jnp.float32),
        grid=(N, n_rt),
        in_specs=[pl.BlockSpec(memory_space=pltpu.MemorySpace.SMEM),
                  pl.BlockSpec((1, sub_b, LANES), lambda n, r: (n, r, 0))],
        out_specs=pl.BlockSpec((1, 1, 2, SUBL, LANES),
                               lambda n, r: (n, r, 0, 0, 0)),
        compiler_params=pltpu.CompilerParams(
            dimension_semantics=("parallel", "parallel")),
    )(thr, pred)
    return jnp.sum(parts[:, :, 0]), jnp.sum(parts[:, :, 1])


def _ohem_mean(pred, sum_lt, cnt_lt, cnt_le, cnt_valid, thresh, min_kept, sub_a):
    """OHEM mean from kernel-A partials; top_k/second pass only on slow path."""
    idx = jnp.minimum(jnp.int32(min_kept), cnt_valid - 1)
    fast = cnt_le >= idx + 1                # <=> k-th smallest pred <= thresh

    def fast_fn(_):
        # threshold == thresh exactly -> partials already hold the answer
        return sum_lt, cnt_lt.astype(jnp.float32)

    def slow_fn(_):
        pred_flat = pred.reshape(-1)
        cand = jnp.where((pred_flat > thresh) & (pred_flat < 1.5),
                         pred_flat, 2.0)    # only candidates above thresh matter
        k_static = int(min(min_kept + 1, cand.shape[0]))
        asc = -lax.top_k(-cand, k_static)[0]            # ascending smallest
        pos = jnp.clip(idx - cnt_le, 0, k_static - 1)
        threshold = jnp.minimum(asc[pos], jnp.float32(1.5))
        return _ohem_masked_sum(pred, threshold, sub_a)

    s, c = lax.cond(fast, fast_fn, slow_fn, 0)
    # TODO(synk): PyTorch returns NaN for an empty keep set; we return 0.
    return jnp.where(c > 0, s / c, 0.0)


# --------------------------------------------------------------------------
# Kernel D: standalone weighted BCE-with-logits partials (non-OHEM path)
# --------------------------------------------------------------------------
def _bce_partial_kernel(logit_ref, tgt_ref, part_ref):
    x = logit_ref[...].astype(jnp.float32)
    t = tgt_ref[...].astype(jnp.float32)
    pos = (t == 1.0).astype(jnp.float32)
    neg = (t == 0.0).astype(jnp.float32)
    bce = jnp.maximum(x, 0.0) - x * t + jnp.log(1.0 + jnp.exp(-jnp.abs(x)))
    part_ref[0, 0] = _fold(bce * pos)
    part_ref[0, 1] = _fold(bce * neg)
    part_ref[0, 2] = _fold(pos)
    part_ref[0, 3] = _fold(neg)


def weighted_bce(bd_pre, bd_gt):
    """bd_pre: (N,1,H,W) logits, bd_gt: (N,H,W) in {0,1}."""
    total = bd_pre.size
    rows_pad, sub = _tile_plan(total, 1, MAX_SUB_FLAT)
    x = bd_pre.reshape(-1)
    t = bd_gt.reshape(-1)
    if t.dtype == jnp.bool_:
        t = t.astype(jnp.int8)
    pad = rows_pad * LANES - total
    if pad:
        x = jnp.pad(x, (0, pad))
        t = jnp.pad(t, (0, pad), constant_values=-1)     # neither pos nor neg
    x = x.reshape(rows_pad, LANES)
    t = t.reshape(rows_pad, LANES)
    n_rt = rows_pad // sub
    parts = pl.pallas_call(
        _bce_partial_kernel,
        out_shape=jax.ShapeDtypeStruct((n_rt, 4, SUBL, LANES), jnp.float32),
        grid=(n_rt,),
        in_specs=[pl.BlockSpec((sub, LANES), lambda i: (i, 0)),
                  pl.BlockSpec((sub, LANES), lambda i: (i, 0))],
        out_specs=pl.BlockSpec((1, 4, SUBL, LANES), lambda i: (i, 0, 0, 0)),
        compiler_params=pltpu.CompilerParams(dimension_semantics=("parallel",)),
    )(x, t)
    s_pos = jnp.sum(parts[:, 0])
    s_neg = jnp.sum(parts[:, 1])
    n_pos = jnp.sum(parts[:, 2].astype(jnp.int32)).astype(jnp.float32)
    n_neg = jnp.sum(parts[:, 3].astype(jnp.int32)).astype(jnp.float32)
    sum_num = n_pos + n_neg
    w = jnp.where(sum_num > 0, (n_neg * s_pos + n_pos * s_neg) / sum_num, 0.0)
    return w / jnp.float32(total)


class BondaryLoss:
    def __init__(self, coeff_bce=20.0):
        self.coeff_bce = float(coeff_bce)

    def __call__(self, bd_pre, bd_gt):
        return self.coeff_bce * weighted_bce(bd_pre, bd_gt)


# --------------------------------------------------------------------------
# Semantic losses
# --------------------------------------------------------------------------
class CrossEntropy:
    def __init__(self, config, ignore_label=-1, weight=None):
        self.ignore_label = int(ignore_label)
        self.config = config
        # TODO(synk): per-class `weight` of nn.CrossEntropyLoss not implemented (PIDNet passes None).

    def _forward(self, score, target):
        s, c_valid, _total = _ce_sums(score, target, self.ignore_label)
        # nn.CrossEntropyLoss(reduction='mean', ignore_index): divide by # non-ignored
        return jnp.where(c_valid > 0, s / c_valid.astype(jnp.float32), 0.0)

    def __call__(self, score, target):
        if self.config.model.num_outputs == 1:
            score = [score]
        if not isinstance(score, (list, tuple)):
            score = [score]
        balance_weights = self.config.loss.balance_weights
        sb_weights = self.config.loss.sb_weights
        if len(balance_weights) == len(score):
            return sum(w * self._forward(x, target)
                       for w, x in zip(balance_weights, score))
        elif len(score) == 1:
            return sb_weights * self._forward(score[0], target)
        else:
            raise ValueError("lengths of prediction and target are not identical!")


class OhemCrossEntropy:
    def __init__(self, config, ignore_label=-1, thres=0.7, min_kept=100000,
                 weight=None):
        self.thresh = float(thres)
        self.config = config
        self.min_kept = max(1, int(min_kept))
        self.ignore_label = int(ignore_label)
        # TODO(synk): per-class `weight` of nn.CrossEntropyLoss not implemented (PIDNet passes None).

    def _ce_forward(self, score, target):
        s, _c_valid, total = _ce_sums(score, target, self.ignore_label)
        # reference: criterion(reduction='none')(...).mean() -> mean over ALL pixels
        return s / jnp.float32(total)

    def _ohem_forward(self, score, target):
        return _ohem_single(score, target, self.ignore_label, self.thresh,
                            self.min_kept)

    def __call__(self, score, target):
        if not isinstance(score, (list, tuple)):
            score = [score]
        balance_weights = self.config.loss.balance_weights
        sb_weights = self.config.loss.sb_weights
        if len(balance_weights) == len(score):
            functions = [self._ce_forward] * (len(balance_weights) - 1) + \
                        [self._ohem_forward]
            return sum(w * func(x, target)
                       for w, x, func in zip(balance_weights, score, functions))
        elif len(score) == 1:
            return sb_weights * self._ohem_forward(score[0], target)
        else:
            raise ValueError("lengths of prediction and target are not identical!")


# --------------------------------------------------------------------------
# Pidnet_loss (forward semantics of the PyTorch reference)
# --------------------------------------------------------------------------
class Pidnet_loss:
    def __init__(self, config, weight=None):
        self.config = config
        self.ohem = config.loss.use_ohem
        self.bd_loss = BondaryLoss()
        if self.ohem:
            self.sem_loss = OhemCrossEntropy(
                config=config, ignore_label=config.train.ignore_label,
                thres=config.loss.ohemthres, min_kept=config.loss.ohemkeep,
                weight=weight)
        else:
            self.sem_loss = CrossEntropy(
                config=config, ignore_label=config.train.ignore_label, weight=weight)

    # fused OHEM path: main-head logits read & LSE'd once for both targets;
    # bd_label gate and weighted-BCE partials computed in the same kernel.
    def _forward_ohem(self, score, labels, bd_gt):
        cfg = self.config
        sem = self.sem_loss
        bw = list(cfg.loss.balance_weights)
        sb = cfg.loss.sb_weights
        sem_scores = list(score[:-1])
        d_head = score[-1]

        if len(bw) == len(sem_scores):
            aux = list(zip(bw[:-1], sem_scores[:-1]))
            w_main = bw[-1]
        elif len(sem_scores) == 1:
            aux = []
            w_main = sb
        else:
            raise ValueError("lengths of prediction and target are not identical!")

        loss_s = jnp.float32(0.0)
        for w, s in aux:                                  # aux heads: plain CE
            ssum, _c, total = _ce_sums(s, labels, sem.ignore_label)
            loss_s = loss_s + w * (ssum / jnp.float32(total))

        ohem_lab, ohem_bd, bce = _fused_main_head(
            sem_scores[-1], labels, d_head[:, 0], bd_gt,
            sem.ignore_label, sem.thresh, sem.min_kept)

        loss_s = loss_s + w_main * ohem_lab
        loss_sb = sb * ohem_bd
        loss_b = self.bd_loss.coeff_bce * bce
        return loss_b + loss_s + loss_sb

    def _forward_plain(self, score, labels, bd_gt):
        loss_s = self.sem_loss(list(score[:-1]), labels)
        loss_b = self.bd_loss(score[-1], bd_gt)
        filler = jnp.full_like(labels, self.config.train.ignore_label)
        bd_label = jnp.where(jax.nn.sigmoid(score[-1][:, 0, :, :]) > 0.8,
                             labels, filler)
        loss_sb = self.sem_loss(score[-2], bd_label)
        return loss_b + loss_s + loss_sb

    def __call__(self, score, labels, bd_gt):
        score = list(score)
        h, w = labels.shape[1], labels.shape[2]
        ph, pw = score[0].shape[2], score[0].shape[3]
        if ph != h or pw != w:
            # TODO(synk): bilinear upsample left to XLA glue; align_corners=True not replicated.
            score = [jax.image.resize(s, (s.shape[0], s.shape[1], h, w),
                                      method="bilinear") for s in score]
        if self.ohem:
            return self._forward_ohem(score, labels, bd_gt)
        return self._forward_plain(score, labels, bd_gt)


# --------------------------------------------------------------------------
# demo
# --------------------------------------------------------------------------
if __name__ == "__main__":
    key = jax.random.PRNGKey(0)
    k1, k2, k3, k4, k5 = jax.random.split(key, 5)

    N, C, H, W = 2, 4, 16, 16
    score_p = jax.random.normal(k1, (N, C, H, W), jnp.float32)   # aux (P-branch) head
    score_i = jax.random.normal(k2, (N, C, H, W), jnp.float32)   # main (I-branch) head
    score_d = jax.random.normal(k3, (N, 1, H, W), jnp.float32)   # boundary (D-branch) head
    labels = jax.random.randint(k4, (N, H, W), -1, C).astype(jnp.int32)  # -1 = ignore
    bd_gt = (jax.random.uniform(k5, (N, H, W)) > 0.9).astype(jnp.float32)

    config = SimpleNamespace(
        model=SimpleNamespace(num_outputs=2, align_corners=False),
        train=SimpleNamespace(ignore_label=-1),
        loss=SimpleNamespace(use_ohem=True,
                             balance_weights=[0.4, 1.0],
                             sb_weights=0.5,
                             ohemthres=0.7,
                             ohemkeep=50))

    loss_fn = Pidnet_loss(config)

    @jax.jit
    def run(sp, si, sd, lab, bd):
        return loss_fn([sp, si, sd], lab, bd)

    out = run(score_p, score_i, score_d, labels, bd_gt)
    jax.block_until_ready(out)
    assert jnp.isfinite(out)
    print("KERNEL_OK")
</pallas_src>

<mosaic_0001>
module attributes {stable_mosaic.version = 11 : i64} {
  func.func @_ce_partial_kernel(%arg0: i32, %arg1: i32, %arg2: memref<1x4x8x128xf32, #tpu.memory_space<vmem>>, %arg3: memref<1x8x128xi32, #tpu.memory_space<vmem>>, %arg4: memref<1x1x2x8x128xf32, #tpu.memory_space<vmem>>) attributes {dimension_semantics = [#tpu.dimension_semantics<parallel>, #tpu.dimension_semantics<parallel>], iteration_bounds = array<i64: 2, 1>, scalar_prefetch = 0 : i64, scratch_operands = 0 : i64, tpu.core_type = #tpu.core_type<tc>, window_params = [{transform_indices = @transform_0, window_bounds = array<i64: 1, 4, 8, 128>}, {transform_indices = @transform_1, window_bounds = array<i64: 1, 8, 128>}, {transform_indices = @transform_2, window_bounds = array<i64: 1, 1, 2, 8, 128>}]} {
    %c0 = arith.constant 0 : index
    %c0_0 = arith.constant 0 : index
    %c0_1 = arith.constant 0 : index
    %0 = vector.load %arg3[%c0, %c0_0, %c0_1] : memref<1x8x128xi32, #tpu.memory_space<vmem>>, vector<1x8x128xi32>
    %1 = vector.shape_cast %0 : vector<1x8x128xi32> to vector<8x128xi32>
    %c0_2 = arith.constant 0 : index
    %c0_3 = arith.constant 0 : index
    %c0_4 = arith.constant 0 : index
    %c0_5 = arith.constant 0 : index
    %2 = vector.load %arg2[%c0_2, %c0_3, %c0_4, %c0_5] : memref<1x4x8x128xf32, #tpu.memory_space<vmem>>, vector<1x1x8x128xf32>
    %3 = vector.shape_cast %2 : vector<1x1x8x128xf32> to vector<8x128xf32>
    %c0_6 = arith.constant 0 : index
    %c1 = arith.constant 1 : index
    %c0_7 = arith.constant 0 : index
    %c0_8 = arith.constant 0 : index
    %4 = vector.load %arg2[%c0_6, %c1, %c0_7, %c0_8] : memref<1x4x8x128xf32, #tpu.memory_space<vmem>>, vector<1x1x8x128xf32>
    %5 = vector.shape_cast %4 : vector<1x1x8x128xf32> to vector<8x128xf32>
    %6 = arith.maximumf %3, %5 : vector<8x128xf32>
    %c0_9 = arith.constant 0 : index
    %c2 = arith.constant 2 : index
    %c0_10 = arith.constant 0 : index
    %c0_11 = arith.constant 0 : index
    %7 = vector.load %arg2[%c0_9, %c2, %c0_10, %c0_11] : memref<1x4x8x128xf32, #tpu.memory_space<vmem>>, vector<1x1x8x128xf32>
    %8 = vector.shape_cast %7 : vector<1x1x8x128xf32> to vector<8x128xf32>
    %9 = arith.maximumf %6, %8 : vector<8x128xf32>
    %c0_12 = arith.constant 0 : index
    %c3 = arith.constant 3 : index
    %c0_13 = arith.constant 0 : index
    %c0_14 = arith.constant 0 : index
    %10 = vector.load %arg2[%c0_12, %c3, %c0_13, %c0_14] : memref<1x4x8x128xf32, #tpu.memory_space<vmem>>, vector<1x1x8x128xf32>
    %11 = vector.shape_cast %10 : vector<1x1x8x128xf32> to vector<8x128xf32>
    %12 = arith.maximumf %9, %11 : vector<8x128xf32>
    %c-1_i32 = arith.constant -1 : i32
    %13 = vector.broadcast %c-1_i32 : i32 to vector<8x128xi32>
    %14 = arith.cmpi ne, %1, %13 : vector<8x128xi32>
    %c0_i32 = arith.constant 0 : i32
    %15 = vector.broadcast %c0_i32 : i32 to vector<8x128xi32>
    %16 = arith.select %14, %1, %15 : vector<8x128xi1>, vector<8x128xi32>
    %c0_15 = arith.constant 0 : index
    %c0_16 = arith.constant 0 : index
    %c0_17 = arith.constant 0 : index
    %c0_18 = arith.constant 0 : index
    %17 = vector.load %arg2[%c0_15, %c0_16, %c0_17, %c0_18] : memref<1x4x8x128xf32, #tpu.memory_space<vmem>>, vector<1x1x8x128xf32>
    %18 = vector.shape_cast %17 : vector<1x1x8x128xf32> to vector<8x128xf32>
    %19 = arith.subf %18, %12 : vector<8x128xf32>
    %20 = math.exp %19 : vector<8x128xf32>
    %c0_19 = arith.constant 0 : index
    %c1_20 = arith.constant 1 : index
    %c0_21 = arith.constant 0 : index
    %c0_22 = arith.constant 0 : index
    %21 = vector.load %arg2[%c0_19, %c1_20, %c0_21, %c0_22] : memref<1x4x8x128xf32, #tpu.memory_space<vmem>>, vector<1x1x8x128xf32>
    %22 = vector.shape_cast %21 : vector<1x1x8x128xf32> to vector<8x128xf32>
    %23 = arith.subf %22, %12 : vector<8x128xf32>
    %24 = math.exp %23 : vector<8x128xf32>
    %25 = arith.addf %20, %24 : vector<8x128xf32>
    %c1_i32 = arith.constant 1 : i32
    %26 = vector.broadcast %c1_i32 : i32 to vector<8x128xi32>
    %27 = arith.cmpi eq, %16, %26 : vector<8x128xi32>
    %28 = arith.select %27, %23, %19 : vector<8x128xi1>, vector<8x128xf32>
    %c0_23 = arith.constant 0 : index
    %c2_24 = arith.constant 2 : index
    %c0_25 = arith.constant 0 : index
    %c0_26 = arith.constant 0 : index
    %29 = vector.load %arg2[%c0_23, %c2_24, %c0_25, %c0_26] : memref<1x4x8x128xf32, #tpu.memory_space<vmem>>, vector<1x1x8x128xf32>
    %30 = vector.shape_cast %29 : vector<1x1x8x128xf32> to vector<8x128xf32>
    %31 = arith.subf %30, %12 : vector<8x128xf32>
    %32 = math.exp %31 : vector<8x128xf32>
    %33 = arith.addf %25, %32 : vector<8x128xf32>
    %c2_i32 = arith.constant 2 : i32
    %34 = vector.broadcast %c2_i32 : i32 to vector<8x128xi32>
    %35 = arith.cmpi eq, %16, %34 : vector<8x128xi32>
    %36 = arith.select %35, %31, %28 : vector<8x128xi1>, vector<8x128xf32>
    %c0_27 = arith.constant 0 : index
    %c3_28 = arith.constant 3 : index
    %c0_29 = arith.constant 0 : index
    %c0_30 = arith.constant 0 : index
    %37 = vector.load %arg2[%c0_27, %c3_28, %c0_29, %c0_30] : memref<1x4x8x128xf32, #tpu.memory_space<vmem>>, vector<1x1x8x128xf32>
    %38 = vector.shape_cast %37 : vector<1x1x8x128xf32> to vector<8x128xf32>
    %39 = arith.subf %38, %12 : vector<8x128xf32>
    %40 = math.exp %39 : vector<8x128xf32>
    %41 = arith.addf %33, %40 : vector<8x128xf32>
    %c3_i32 = arith.constant 3 : i32
    %42 = vector.broadcast %c3_i32 : i32 to vector<8x128xi32>
    %43 = arith.cmpi eq, %16, %42 : vector<8x128xi32>
    %44 = arith.select %43, %39, %36 : vector<8x128xi1>, vector<8x128xf32>
    %45 = math.log %41 : vector<8x128xf32>
    %46 = arith.subf %45, %44 : vector<8x128xf32>
    %cst = arith.constant 0.000000e+00 : f32
    %47 = vector.broadcast %cst : f32 to vector<8x128xf32>
    %48 = arith.select %14, %46, %47 : vector<8x128xi1>, vector<8x128xf32>
    %c0_31 = arith.constant 0 : index
    %c0_32 = arith.constant 0 : index
    %c0_33 = arith.constant 0 : index
    %c0_34 = arith.constant 0 : index
    %c0_35 = arith.constant 0 : index
    %49 = vector.load %arg4[%c0_31, %c0_32, %c0_33, %c0_34, %c0_35] : memref<1x1x2x8x128xf32, #tpu.memory_space<vmem>>, vector<1x1x1x8x128xf32>
    %50 = vector.shape_cast %49 : vector<1x1x1x8x128xf32> to vector<8x128xf32>
    %51 = vector.shape_cast %48 : vector<8x128xf32> to vector<1x1x1x8x128xf32>
    tpu.vector_store %arg4[%c0_31, %c0_32, %c0_33, %c0_34, %c0_35], %51 {strides = array<i32>} : memref<1x1x2x8x128xf32, #tpu.memory_space<vmem>>, vector<1x1x1x8x128xf32>,
    %52 = arith.extui %14 : vector<8x128xi1> to vector<8x128xi32>
    %53 = arith.sitofp %52 : vector<8x128xi32> to vector<8x128xf32>
    %c0_36 = arith.constant 0 : index
    %c0_37 = arith.constant 0 : index
    %c1_38 = arith.constant 1 : index
    %c0_39 = arith.constant 0 : index
    %c0_40 = arith.constant 0 : index
    %54 = vector.load %arg4[%c0_36, %c0_37, %c1_38, %c0_39, %c0_40] : memref<1x1x2x8x128xf32, #tpu.memory_space<vmem>>, vector<1x1x1x8x128xf32>
    %55 = vector.shape_cast %54 : vector<1x1x1x8x128xf32> to vector<8x128xf32>
    %56 = vector.shape_cast %53 : vector<8x128xf32> to vector<1x1x1x8x128xf32>
    tpu.vector_store %arg4[%c0_36, %c0_37, %c1_38, %c0_39, %c0_40], %56 {strides = array<i32>} : memref<1x1x2x8x128xf32, #tpu.memory_space<vmem>>, vector<1x1x1x8x128xf32>,
    return
  }
  func.func @transform_0(%arg0: i32, %arg1: i32) -> (i32, i32, i32, i32) {
    %c0_i32 = arith.constant 0 : i32
    %c0_i32_0 = arith.constant 0 : i32
    %c0_i32_1 = arith.constant 0 : i32
    return %arg0, %c0_i32, %arg1, %c0_i32_0 : i32, i32, i32, i32
  }
  func.func @transform_1(%arg0: i32, %arg1: i32) -> (i32, i32, i32) {
    %c0_i32 = arith.constant 0 : i32
    %c0_i32_0 = arith.constant 0 : i32
    return %arg0, %arg1, %c0_i32 : i32, i32, i32
  }
  func.func @transform_2(%arg0: i32, %arg1: i32) -> (i32, i32, i32, i32, i32) {
    %c0_i32 = arith.constant 0 : i32
    %c0_i32_0 = arith.constant 0 : i32
    %c0_i32_1 = arith.constant 0 : i32
    %c0_i32_2 = arith.constant 0 : i32
    return %arg0, %arg1, %c0_i32, %c0_i32_0, %c0_i32_1 : i32, i32, i32, i32, i32
  }
}

module attributes {stable_mosaic.version = 11 : i64} {
  func.func @_fused_main_kernel(%arg0: i32, %arg1: i32, %arg2: memref<1x4x8x128xf32, #tpu.memory_space<vmem>>, %arg3: memref<1x8x128xi32, #tpu.memory_space<vmem>>, %arg4: memref<1x8x128xf32, #tpu.memory_space<vmem>>, %arg5: memref<1x8x128xf32, #tpu.memory_space<vmem>>, %arg6: memref<1x8x128xf32, #tpu.memory_space<vmem>>, %arg7: memref<1x8x128xf32, #tpu.memory_space<vmem>>, %arg8: memref<1x1x12x8x128xf32, #tpu.memory_space<vmem>>) attributes {dimension_semantics = [#tpu.dimension_semantics<parallel>, #tpu.dimension_semantics<parallel>], iteration_bounds = array<i64: 2, 1>, scalar_prefetch = 0 : i64, scratch_operands = 0 : i64, tpu.core_type = #tpu.core_type<tc>, window_params = [{transform_indices = @transform_0, window_bounds = array<i64: 1, 4, 8, 128>}, {transform_indices = @transform_1, window_bounds = array<i64: 1, 8, 128>}, {transform_indices = @transform_2, window_bounds = array<i64: 1, 8, 128>}, {transform_indices = @transform_3, window_bounds = array<i64: 1, 8, 128>}, {transform_indices = @transform_4, window_bounds = array<i64: 1, 8, 128>}, {transform_indices = @transform_5, window_bounds = array<i64: 1, 8, 128>}, {transform_indices = @transform_6, window_bounds = array<i64: 1, 1, 12, 8, 128>}]} {
    %c0 = arith.constant 0 : index
    %c0_0 = arith.constant 0 : index
    %c0_1 = arith.constant 0 : index
    %0 = vector.load %arg3[%c0, %c0_0, %c0_1] : memref<1x8x128xi32, #tpu.memory_space<vmem>>, vector<1x8x128xi32>
    %1 = vector.shape_cast %0 : vector<1x8x128xi32> to vector<8x128xi32>
    %c0_2 = arith.constant 0 : index
    %c0_3 = arith.constant 0 : index
    %c0_4 = arith.constant 0 : index
    %c0_5 = arith.constant 0 : index
    %2 = vector.load %arg2[%c0_2, %c0_3, %c0_4, %c0_5] : memref<1x4x8x128xf32, #tpu.memory_space<vmem>>, vector<1x1x8x128xf32>
    %3 = vector.shape_cast %2 : vector<1x1x8x128xf32> to vector<8x128xf32>
    %c0_6 = arith.constant 0 : index
    %c1 = arith.constant 1 : index
    %c0_7 = arith.constant 0 : index
    %c0_8 = arith.constant 0 : index
    %4 = vector.load %arg2[%c0_6, %c1, %c0_7, %c0_8] : memref<1x4x8x128xf32, #tpu.memory_space<vmem>>, vector<1x1x8x128xf32>
    %5 = vector.shape_cast %4 : vector<1x1x8x128xf32> to vector<8x128xf32>
    %6 = arith.maximumf %3, %5 : vector<8x128xf32>
    %c0_9 = arith.constant 0 : index
    %c2 = arith.constant 2 : index
    %c0_10 = arith.constant 0 : index
    %c0_11 = arith.constant 0 : index
    %7 = vector.load %arg2[%c0_9, %c2, %c0_10, %c0_11] : memref<1x4x8x128xf32, #tpu.memory_space<vmem>>, vector<1x1x8x128xf32>
    %8 = vector.shape_cast %7 : vector<1x1x8x128xf32> to vector<8x128xf32>
    %9 = arith.maximumf %6, %8 : vector<8x128xf32>
    %c0_12 = arith.constant 0 : index
    %c3 = arith.constant 3 : index
    %c0_13 = arith.constant 0 : index
    %c0_14 = arith.constant 0 : index
    %10 = vector.load %arg2[%c0_12, %c3, %c0_13, %c0_14] : memref<1x4x8x128xf32, #tpu.memory_space<vmem>>, vector<1x1x8x128xf32>
    %11 = vector.shape_cast %10 : vector<1x1x8x128xf32> to vector<8x128xf32>
    %12 = arith.maximumf %9, %11 : vector<8x128xf32>
    %c-1_i32 = arith.constant -1 : i32
    %13 = vector.broadcast %c-1_i32 : i32 to vector<8x128xi32>
    %14 = arith.cmpi ne, %1, %13 : vector<8x128xi32>
    %c0_i32 = arith.constant 0 : i32
    %15 = vector.broadcast %c0_i32 : i32 to vector<8x128xi32>
    %16 = arith.select %14, %1, %15 : vector<8x128xi1>, vector<8x128xi32>
    %c0_15 = arith.constant 0 : index
    %c0_16 = arith.constant 0 : index
    %c0_17 = arith.constant 0 : index
    %c0_18 = arith.constant 0 : index
    %17 = vector.load %arg2[%c0_15, %c0_16, %c0_17, %c0_18] : memref<1x4x8x128xf32, #tpu.memory_space<vmem>>, vector<1x1x8x128xf32>
    %18 = vector.shape_cast %17 : vector<1x1x8x128xf32> to vector<8x128xf32>
    %19 = arith.subf %18, %12 : vector<8x128xf32>
    %20 = math.exp %19 : vector<8x128xf32>
    %c0_19 = arith.constant 0 : index
    %c1_20 = arith.constant 1 : index
    %c0_21 = arith.constant 0 : index
    %c0_22 = arith.constant 0 : index
    %21 = vector.load %arg2[%c0_19, %c1_20, %c0_21, %c0_22] : memref<1x4x8x128xf32, #tpu.memory_space<vmem>>, vector<1x1x8x128xf32>
    %22 = vector.shape_cast %21 : vector<1x1x8x128xf32> to vector<8x128xf32>
    %23 = arith.subf %22, %12 : vector<8x128xf32>
    %24 = math.exp %23 : vector<8x128xf32>
    %25 = arith.addf %20, %24 : vector<8x128xf32>
    %c1_i32 = arith.constant 1 : i32
    %26 = vector.broadcast %c1_i32 : i32 to vector<8x128xi32>
    %27 = arith.cmpi eq, %16, %26 : vector<8x128xi32>
    %28 = arith.select %27, %23, %19 : vector<8x128xi1>, vector<8x128xf32>
    %c0_23 = arith.constant 0 : index
    %c2_24 = arith.constant 2 : index
    %c0_25 = arith.constant 0 : index
    %c0_26 = arith.constant 0 : index
    %29 = vector.load %arg2[%c0_23, %c2_24, %c0_25, %c0_26] : memref<1x4x8x128xf32, #tpu.memory_space<vmem>>, vector<1x1x8x128xf32>
    %30 = vector.shape_cast %29 : vector<1x1x8x128xf32> to vector<8x128xf32>
    %31 = arith.subf %30, %12 : vector<8x128xf32>
    %32 = math.exp %31 : vector<8x128xf32>
    %33 = arith.addf %25, %32 : vector<8x128xf32>
    %c2_i32 = arith.constant 2 : i32
    %34 = vector.broadcast %c2_i32 : i32 to vector<8x128xi32>
    %35 = arith.cmpi eq, %16, %34 : vector<8x128xi32>
    %36 = arith.select %35, %31, %28 : vector<8x128xi1>, vector<8x128xf32>
    %c0_27 = arith.constant 0 : index
    %c3_28 = arith.constant 3 : index
    %c0_29 = arith.constant 0 : index
    %c0_30 = arith.constant 0 : index
    %37 = vector.load %arg2[%c0_27, %c3_28, %c0_29, %c0_30] : memref<1x4x8x128xf32, #tpu.memory_space<vmem>>, vector<1x1x8x128xf32>
    %38 = vector.shape_cast %37 : vector<1x1x8x128xf32> to vector<8x128xf32>
    %39 = arith.subf %38, %12 : vector<8x128xf32>
    %40 = math.exp %39 : vector<8x128xf32>
    %41 = arith.addf %33, %40 : vector<8x128xf32>
    %c3_i32 = arith.constant 3 : i32
    %42 = vector.broadcast %c3_i32 : i32 to vector<8x128xi32>
    %43 = arith.cmpi eq, %16, %42 : vector<8x128xi32>
    %44 = arith.select %43, %39, %36 : vector<8x128xi1>, vector<8x128xf32>
    %45 = math.log %41 : vector<8x128xf32>
    %46 = arith.subf %45, %44 : vector<8x128xf32>
    %47 = arith.subf %44, %45 : vector<8x128xf32>
    %48 = math.exp %47 : vector<8x128xf32>
    %c0_31 = arith.constant 0 : index
    %c0_32 = arith.constant 0 : index
    %c0_33 = arith.constant 0 : index
    %49 = vector.load %arg4[%c0_31, %c0_32, %c0_33] : memref<1x8x128xf32, #tpu.memory_space<vmem>>, vector<1x8x128xf32>
    %50 = vector.shape_cast %49 : vector<1x8x128xf32> to vector<8x128xf32>
    %cst = arith.constant 0.000000e+00 : f32
    %51 = vector.broadcast %cst : f32 to vector<8x128xf32>
    %52 = arith.subf %51, %50 : vector<8x128xf32>
    %53 = math.exp %52 : vector<8x128xf32>
    %cst_34 = arith.constant 1.000000e+00 : f32
    %54 = vector.broadcast %cst_34 : f32 to vector<8x128xf32>
    %55 = arith.addf %54, %53 : vector<8x128xf32>
    %cst_35 = arith.constant 1.000000e+00 : f32
    %56 = vector.broadcast %cst_35 : f32 to vector<8x128xf32>
    %57 = arith.divf %56, %55 : vector<8x128xf32>
    %cst_36 = arith.constant 8.000000e-01 : f32
    %58 = vector.broadcast %cst_36 : f32 to vector<8x128xf32>
    %59 = arith.cmpf ogt, %57, %58 : vector<8x128xf32>
    %60 = arith.andi %14, %59 : vector<8x128xi1>
    %cst_37 = arith.constant 2.000000e+00 : f32
    %61 = vector.broadcast %cst_37 : f32 to vector<8x128xf32>
    %62 = arith.select %14, %48, %61 : vector<8x128xi1>, vector<8x128xf32>
    %cst_38 = arith.constant 2.000000e+00 : f32
    %63 = vector.broadcast %cst_38 : f32 to vector<8x128xf32>
    %64 = arith.select %60, %48, %63 : vector<8x128xi1>, vector<8x128xf32>
    %c0_39 = arith.constant 0 : index
    %c0_40 = arith.constant 0 : index
    %c0_41 = arith.constant 0 : index
    %65 = vector.load %arg6[%c0_39, %c0_40, %c0_41] : memref<1x8x128xf32, #tpu.memory_space<vmem>>, vector<1x8x128xf32>
    %66 = vector.shape_cast %65 : vector<1x8x128xf32> to vector<8x128xf32>
    %67 = vector.shape_cast %62 : vector<8x128xf32> to vector<1x8x128xf32>
    tpu.vector_store %arg6[%c0_39, %c0_40, %c0_41], %67 {strides = array<i32>} : memref<1x8x128xf32, #tpu.memory_space<vmem>>, vector<1x8x128xf32>,
    %c0_42 = arith.constant 0 : index
    %c0_43 = arith.constant 0 : index
    %c0_44 = arith.constant 0 : index
    %68 = vector.load %arg7[%c0_42, %c0_43, %c0_44] : memref<1x8x128xf32, #tpu.memory_space<vmem>>, vector<1x8x128xf32>
    %69 = vector.shape_cast %68 : vector<1x8x128xf32> to vector<8x128xf32>
    %70 = vector.shape_cast %64 : vector<8x128xf32> to vector<1x8x128xf32>
    tpu.vector_store %arg7[%c0_42, %c0_43, %c0_44], %70 {strides = array<i32>} : memref<1x8x128xf32, #tpu.memory_space<vmem>>, vector<1x8x128xf32>,
    %cst_45 = arith.constant 0.699999988 : f32
    %71 = vector.broadcast %cst_45 : f32 to vector<8x128xf32>
    %72 = arith.cmpf olt, %62, %71 : vector<8x128xf32>
    %cst_46 = arith.constant 0.000000e+00 : f32
    %73 = vector.broadcast %cst_46 : f32 to vector<8x128xf32>
    %74 = arith.select %72, %46, %73 : vector<8x128xi1>, vector<8x128xf32>
    %c0_47 = arith.constant 0 : index
    %c0_48 = arith.constant 0 : index
    %c0_49 = arith.constant 0 : index
    %c0_50 = arith.constant 0 : index
    %c0_51 = arith.constant 0 : index
    %75 = vector.load %arg8[%c0_47, %c0_48, %c0_49, %c0_50, %c0_51] : memref<1x1x12x8x128xf32, #tpu.memory_space<vmem>>, vector<1x1x1x8x128xf32>
    %76 = vector.shape_cast %75 : vector<1x1x1x8x128xf32> to vector<8x128xf32>
    %77 = vector.shape_cast %74 : vector<8x128xf32> to vector<1x1x1x8x128xf32>
    tpu.vector_store %arg8[%c0_47, %c0_48, %c0_49, %c0_50, %c0_51], %77 {strides = array<i32>} : memref<1x1x12x8x128xf32, #tpu.memory_space<vmem>>, vector<1x1x1x8x128xf32>,
    %78 = arith.extui %72 : vector<8x128xi1> to vector<8x128xi32>
    %79 = arith.sitofp %78 : vector<8x128xi32> to vector<8x128xf32>
    %c0_52 = arith.constant 0 : index
    %c0_53 = arith.constant 0 : index
    %c1_54 = arith.constant 1 : index
    %c0_55 = arith.constant 0 : index
    %c0_56 = arith.constant 0 : index
    %80 = vector.load %arg8[%c0_52, %c0_53, %c1_54, %c0_55, %c0_56] : memref<1x1x12x8x128xf32, #tpu.memory_space<vmem>>, vector<1x1x1x8x128xf32>
    %81 = vector.shape_cast %80 : vector<1x1x1x8x128xf32> to vector<8x128xf32>
    %82 = vector.shape_cast %79 : vector<8x128xf32> to vector<1x1x1x8x128xf32>
    tpu.vector_store %arg8[%c0_52, %c0_53, %c1_54, %c0_55, %c0_56], %82 {strides = array<i32>} : memref<1x1x12x8x128xf32, #tpu.memory_space<vmem>>, vector<1x1x1x8x128xf32>,
    %cst_57 = arith.constant 0.699999988 : f32
    %83 = vector.broadcast %cst_57 : f32 to vector<8x128xf32>
    %84 = arith.cmpf ole, %62, %83 : vector<8x128xf32>
    %85 = arith.extui %84 : vector<8x128xi1> to vector<8x128xi32>
    %86 = arith.sitofp %85 : vector<8x128xi32> to vector<8x128xf32>
    %c0_58 = arith.constant 0 : index
    %c0_59 = arith.constant 0 : index
    %c2_60 = arith.constant 2 : index
    %c0_61 = arith.constant 0 : index
    %c0_62 = arith.constant 0 : index
    %87 = vector.load %arg8[%c0_58, %c0_59, %c2_60, %c0_61, %c0_62] : memref<1x1x12x8x128xf32, #tpu.memory_space<vmem>>, vector<1x1x1x8x128xf32>
    %88 = vector.shape_cast %87 : vector<1x1x1x8x128xf32> to vector<8x128xf32>
    %89 = vector.shape_cast %86 : vector<8x128xf32> to vector<1x1x1x8x128xf32>
    tpu.vector_store %arg8[%c0_58, %c0_59, %c2_60, %c0_61, %c0_62], %89 {strides = array<i32>} : memref<1x1x12x8x128xf32, #tpu.memory_space<vmem>>, vector<1x1x1x8x128xf32>,
    %cst_63 = arith.constant 0.699999988 : f32
    %90 = vector.broadcast %cst_63 : f32 to vector<8x128xf32>
    %91 = arith.cmpf olt, %64, %90 : vector<8x128xf32>
    %cst_64 = arith.constant 0.000000e+00 : f32
    %92 = vector.broadcast %cst_64 : f32 to vector<8x128xf32>
    %93 = arith.select %91, %46, %92 : vector<8x128xi1>, vector<8x128xf32>
    %c0_65 = arith.constant 0 : index
    %c0_66 = arith.constant 0 : index
    %c4 = arith.constant 4 : index
    %c0_67 = arith.constant 0 : index
    %c0_68 = arith.constant 0 : index
    %94 = vector.load %arg8[%c0_65, %c0_66, %c4, %c0_67, %c0_68] : memref<1x1x12x8x128xf32, #tpu.memory_space<vmem>>, vector<1x1x1x8x128xf32>
    %95 = vector.shape_cast %94 : vector<1x1x1x8x128xf32> to vector<8x128xf32>
    %96 = vector.shape_cast %93 : vector<8x128xf32> to vector<1x1x1x8x128xf32>
    tpu.vector_store %arg8[%c0_65, %c0_66, %c4, %c0_67, %c0_68], %96 {strides = array<i32>} : memref<1x1x12x8x128xf32, #tpu.memory_space<vmem>>, vector<1x1x1x8x128xf32>,
    %97 = arith.extui %91 : vector<8x128xi1> to vector<8x128xi32>
    %98 = arith.sitofp %97 : vector<8x128xi32> to vector<8x128xf32>
    %c0_69 = arith.constant 0 : index
    %c0_70 = arith.constant 0 : index
    %c5 = arith.constant 5 : index
    %c0_71 = arith.constant 0 : index
    %c0_72 = arith.constant 0 : index
    %99 = vector.load %arg8[%c0_69, %c0_70, %c5, %c0_71, %c0_72] : memref<1x1x12x8x128xf32, #tpu.memory_space<vmem>>, vector<1x1x1x8x128xf32>
    %100 = vector.shape_cast %99 : vector<1x1x1x8x128xf32> to vector<8x128xf32>
    %101 = vector.shape_cast %98 : vector<8x128xf32> to vector<1x1x1x8x128xf32>
    tpu.vector_store %arg8[%c0_69, %c0_70, %c5, %c0_71, %c0_72], %101 {strides = array<i32>} : memref<1x1x12x8x128xf32, #tpu.memory_space<vmem>>, vector<1x1x1x8x128xf32>,
    %cst_73 = arith.constant 0.699999988 : f32
    %102 = vector.broadcast %cst_73 : f32 to vector<8x128xf32>
    %103 = arith.cmpf ole, %64, %102 : vector<8x128xf32>
    %104 = arith.extui %103 : vector<8x128xi1> to vector<8x128xi32>
    %105 = arith.sitofp %104 : vector<8x128xi32> to vector<8x128xf32>
    %c0_74 = arith.constant 0 : index
    %c0_75 = arith.constant 0 : index
    %c6 = arith.constant 6 : index
    %c0_76 = arith.constant 0 : index
    %c0_77 = arith.constant 0 : index
    %106 = vector.load %arg8[%c0_74, %c0_75, %c6, %c0_76, %c0_77] : memref<1x1x12x8x128xf32, #tpu.memory_space<vmem>>, vector<1x1x1x8x128xf32>
    %107 = vector.shape_cast %106 : vector<1x1x1x8x128xf32> to vector<8x128xf32>
    %108 = vector.shape_cast %105 : vector<8x128xf32> to vector<1x1x1x8x128xf32>
    tpu.vector_store %arg8[%c0_74, %c0_75, %c6, %c0_76, %c0_77], %108 {strides = array<i32>} : memref<1x1x12x8x128xf32, #tpu.memory_space<vmem>>, vector<1x1x1x8x128xf32>,
    %109 = arith.extui %14 : vector<8x128xi1> to vector<8x128xi32>
    %110 = arith.sitofp %109 : vector<8x128xi32> to vector<8x128xf32>
    %c0_78 = arith.constant 0 : index
    %c0_79 = arith.constant 0 : index
    %c3_80 = arith.constant 3 : index
    %c0_81 = arith.constant 0 : index
    %c0_82 = arith.constant 0 : index
    %111 = vector.load %arg8[%c0_78, %c0_79, %c3_80, %c0_81, %c0_82] : memref<1x1x12x8x128xf32, #tpu.memory_space<vmem>>, vector<1x1x1x8x128xf32>
    %112 = vector.shape_cast %111 : vector<1x1x1x8x128xf32> to vector<8x128xf32>
    %113 = vector.shape_cast %110 : vector<8x128xf32> to vector<1x1x1x8x128xf32>
    tpu.vector_store %arg8[%c0_78, %c0_79, %c3_80, %c0_81, %c0_82], %113 {strides = array<i32>} : memref<1x1x12x8x128xf32, #tpu.memory_space<vmem>>, vector<1x1x1x8x128xf32>,
    %114 = arith.extui %60 : vector<8x128xi1> to vector<8x128xi32>
    %115 = arith.sitofp %114 : vector<8x128xi32> to vector<8x128xf32>
    %c0_83 = arith.constant 0 : index
    %c0_84 = arith.constant 0 : index
    %c7 = arith.constant 7 : index
    %c0_85 = arith.constant 0 : index
    %c0_86 = arith.constant 0 : index
    %116 = vector.load %arg8[%c0_83, %c0_84, %c7, %c0_85, %c0_86] : memref<1x1x12x8x128xf32, #tpu.memory_space<vmem>>, vector<1x1x1x8x128xf32>
    %117 = vector.shape_cast %116 : vector<1x1x1x8x128xf32> to vector<8x128xf32>
    %118 = vector.shape_cast %115 : vector<8x128xf32> to vector<1x1x1x8x128xf32>
    tpu.vector_store %arg8[%c0_83, %c0_84, %c7, %c0_85, %c0_86], %118 {strides = array<i32>} : memref<1x1x12x8x128xf32, #tpu.memory_space<vmem>>, vector<1x1x1x8x128xf32>,
    %c0_87 = arith.constant 0 : index
    %c0_88 = arith.constant 0 : index
    %c0_89 = arith.constant 0 : index
    %119 = vector.load %arg5[%c0_87, %c0_88, %c0_89] : memref<1x8x128xf32, #tpu.memory_space<vmem>>, vector<1x8x128xf32>
    %120 = vector.shape_cast %119 : vector<1x8x128xf32> to vector<8x128xf32>
    %cst_90 = arith.constant 1.000000e+00 : f32
    %121 = vector.broadcast %cst_90 : f32 to vector<8x128xf32>
    %122 = arith.cmpf oeq, %120, %121 : vector<8x128xf32>
    %123 = arith.extui %122 : vector<8x128xi1> to vector<8x128xi32>
    %124 = arith.sitofp %123 : vector<8x128xi32> to vector<8x128xf32>
    %cst_91 = arith.constant 0.000000e+00 : f32
    %125 = vector.broadcast %cst_91 : f32 to vector<8x128xf32>
    %126 = arith.cmpf oeq, %120, %125 : vector<8x128xf32>
    %127 = arith.extui %126 : vector<8x128xi1> to vector<8x128xi32>
    %128 = arith.sitofp %127 : vector<8x128xi32> to vector<8x128xf32>
    %cst_92 = arith.constant 0.000000e+00 : f32
    %129 = vector.broadcast %cst_92 : f32 to vector<8x128xf32>
    %130 = arith.maximumf %50, %129 : vector<8x128xf32>
    %131 = arith.mulf %50, %120 : vector<8x128xf32>
    %132 = arith.subf %130, %131 : vector<8x128xf32>
    %133 = math.absf %50 : vector<8x128xf32>
    %cst_93 = arith.constant 0.000000e+00 : f32
    %134 = vector.broadcast %cst_93 : f32 to vector<8x128xf32>
    %135 = arith.subf %134, %133 : vector<8x128xf32>
    %136 = math.exp %135 : vector<8x128xf32>
    %cst_94 = arith.constant 1.000000e+00 : f32
    %137 = vector.broadcast %cst_94 : f32 to vector<8x128xf32>
    %138 = arith.addf %137, %136 : vector<8x128xf32>
    %139 = math.log %138 : vector<8x128xf32>
    %140 = arith.addf %132, %139 : vector<8x128xf32>
    %141 = arith.mulf %140, %124 : vector<8x128xf32>
    %c0_95 = arith.constant 0 : index
    %c0_96 = arith.constant 0 : index
    %c8 = arith.constant 8 : index
    %c0_97 = arith.constant 0 : index
    %c0_98 = arith.constant 0 : index
    %142 = vector.load %arg8[%c0_95, %c0_96, %c8, %c0_97, %c0_98] : memref<1x1x12x8x128xf32, #tpu.memory_space<vmem>>, vector<1x1x1x8x128xf32>
    %143 = vector.shape_cast %142 : vector<1x1x1x8x128xf32> to vector<8x128xf32>
    %144 = vector.shape_cast %141 : vector<8x128xf32> to vector<1x1x1x8x128xf32>
    tpu.vector_store %arg8[%c0_95, %c0_96, %c8, %c0_97, %c0_98], %144 {strides = array<i32>} : memref<1x1x12x8x128xf32, #tpu.memory_space<vmem>>, vector<1x1x1x8x128xf32>,
    %145 = arith.mulf %140, %128 : vector<8x128xf32>
    %c0_99 = arith.constant 0 : index
    %c0_100 = arith.constant 0 : index
    %c9 = arith.constant 9 : index
    %c0_101 = arith.constant 0 : index
    %c0_102 = arith.constant 0 : index
    %146 = vector.load %arg8[%c0_99, %c0_100, %c9, %c0_101, %c0_102] : memref<1x1x12x8x128xf32, #tpu.memory_space<vmem>>, vector<1x1x1x8x128xf32>
    %147 = vector.shape_cast %146 : vector<1x1x1x8x128xf32> to vector<8x128xf32>
    %148 = vector.shape_cast %145 : vector<8x128xf32> to vector<1x1x1x8x128xf32>
    tpu.vector_store %arg8[%c0_99, %c0_100, %c9, %c0_101, %c0_102], %148 {strides = array<i32>} : memref<1x1x12x8x128xf32, #tpu.memory_space<vmem>>, vector<1x1x1x8x128xf32>,
    %c0_103 = arith.constant 0 : index
    %c0_104 = arith.constant 0 : index
    %c10 = arith.constant 10 : index
    %c0_105 = arith.constant 0 : index
    %c0_106 = arith.constant 0 : index
    %149 = vector.load %arg8[%c0_103, %c0_104, %c10, %c0_105, %c0_106] : memref<1x1x12x8x128xf32, #tpu.memory_space<vmem>>, vector<1x1x1x8x128xf32>
    %150 = vector.shape_cast %149 : vector<1x1x1x8x128xf32> to vector<8x128xf32>
    %151 = vector.shape_cast %124 : vector<8x128xf32> to vector<1x1x1x8x128xf32>
    tpu.vector_store %arg8[%c0_103, %c0_104, %c10, %c0_105, %c0_106], %151 {strides = array<i32>} : memref<1x1x12x8x128xf32, #tpu.memory_space<vmem>>, vector<1x1x1x8x128xf32>,
    %c0_107 = arith.constant 0 : index
    %c0_108 = arith.constant 0 : index
    %c11 = arith.constant 11 : index
    %c0_109 = arith.constant 0 : index
    %c0_110 = arith.constant 0 : index
    %152 = vector.load %arg8[%c0_107, %c0_108, %c11, %c0_109, %c0_110] : memref<1x1x12x8x128xf32, #tpu.memory_space<vmem>>, vector<1x1x1x8x128xf32>
    %153 = vector.shape_cast %152 : vector<1x1x1x8x128xf32> to vector<8x128xf32>
    %154 = vector.shape_cast %128 : vector<8x128xf32> to vector<1x1x1x8x128xf32>
    tpu.vector_store %arg8[%c0_107, %c0_108, %c11, %c0_109, %c0_110], %154 {strides = array<i32>} : memref<1x1x12x8x128xf32, #tpu.memory_space<vmem>>, vector<1x1x1x8x128xf32>,
    return
  }
  func.func @transform_0(%arg0: i32, %arg1: i32) -> (i32, i32, i32, i32) {
    %c0_i32 = arith.constant 0 : i32
    %c0_i32_0 = arith.constant 0 : i32
    %c0_i32_1 = arith.constant 0 : i32
    return %arg0, %c0_i32, %arg1, %c0_i32_0 : i32, i32, i32, i32
  }
  func.func @transform_1(%arg0: i32, %arg1: i32) -> (i32, i32, i32) {
    %c0_i32 = arith.constant 0 : i32
    %c0_i32_0 = arith.constant 0 : i32
    return %arg0, %arg1, %c0_i32 : i32, i32, i32
  }
  func.func @transform_2(%arg0: i32, %arg1: i32) -> (i32, i32, i32) {
    %c0_i32 = arith.constant 0 : i32
    %c0_i32_0 = arith.constant 0 : i32
    return %arg0, %arg1, %c0_i32 : i32, i32, i32
  }
  func.func @transform_3(%arg0: i32, %arg1: i32) -> (i32, i32, i32) {
    %c0_i32 = arith.constant 0 : i32
    %c0_i32_0 = arith.constant 0 : i32
    return %arg0, %arg1, %c0_i32 : i32, i32, i32
  }
  func.func @transform_4(%arg0: i32, %arg1: i32) -> (i32, i32, i32) {
    %c0_i32 = arith.constant 0 : i32
    %c0_i32_0 = arith.constant 0 : i32
    return %arg0, %arg1, %c0_i32 : i32, i32, i32
  }
  func.func @transform_5(%arg0: i32, %arg1: i32) -> (i32, i32, i32) {
    %c0_i32 = arith.constant 0 : i32
    %c0_i32_0 = arith.constant 0 : i32
    return %arg0, %arg1, %c0_i32 : i32, i32, i32
  }
  func.func @transform_6(%arg0: i32, %arg1: i32) -> (i32, i32, i32, i32, i32) {
    %c0_i32 = arith.constant 0 : i32
    %c0_i32_0 = arith.constant 0 : i32
    %c0_i32_1 = arith.constant 0 : i32
    %c0_i32_2 = arith.constant 0 : i32
    return %arg0, %arg1, %c0_i32, %c0_i32_0, %c0_i32_1 : i32, i32, i32, i32, i32
  }
}

module attributes {stable_mosaic.version = 11 : i64} {
  func.func @_ohem_sum_kernel(%arg0: i32, %arg1: i32, %arg2: memref<1xf32, #tpu.memory_space<smem>>, %arg3: memref<1x8x128xf32, #tpu.memory_space<vmem>>, %arg4: memref<1x1x2x8x128xf32, #tpu.memory_space<vmem>>) attributes {dimension_semantics = [#tpu.dimension_semantics<parallel>, #tpu.dimension_semantics<parallel>], iteration_bounds = array<i64: 2, 1>, scalar_prefetch = 0 : i64, scratch_operands = 0 : i64, tpu.core_type = #tpu.core_type<tc>, window_params = [{transform_indices = @transform_0, window_bounds = array<i64: 1>}, {transform_indices = @transform_1, window_bounds = array<i64: 1, 8, 128>}, {transform_indices = @transform_2, window_bounds = array<i64: 1, 1, 2, 8, 128>}]} {
    %c0 = arith.constant 0 : index
    %0 = memref.load %arg2[%c0] : memref<1xf32, #tpu.memory_space<smem>>
    %c0_0 = arith.constant 0 : index
    %c0_1 = arith.constant 0 : index
    %c0_2 = arith.constant 0 : index
    %1 = vector.load %arg3[%c0_0, %c0_1, %c0_2] : memref<1x8x128xf32, #tpu.memory_space<vmem>>, vector<1x8x128xf32>
    %2 = vector.shape_cast %1 : vector<1x8x128xf32> to vector<8x128xf32>
    %3 = vector.broadcast %0 : f32 to vector<8x128xf32>
    %4 = arith.cmpf olt, %2, %3 : vector<8x128xf32>
    %cst = arith.constant 9.99999991E-38 : f32
    %5 = vector.broadcast %cst : f32 to vector<8x128xf32>
    %6 = arith.maximumf %2, %5 : vector<8x128xf32>
    %7 = math.log %6 : vector<8x128xf32>
    %cst_3 = arith.constant 0.000000e+00 : f32
    %8 = vector.broadcast %cst_3 : f32 to vector<8x128xf32>
    %9 = arith.subf %8, %7 : vector<8x128xf32>
    %cst_4 = arith.constant 0.000000e+00 : f32
    %10 = vector.broadcast %cst_4 : f32 to vector<8x128xf32>
    %11 = arith.select %4, %9, %10 : vector<8x128xi1>, vector<8x128xf32>
    %c0_5 = arith.constant 0 : index
    %c0_6 = arith.constant 0 : index
    %c0_7 = arith.constant 0 : index
    %c0_8 = arith.constant 0 : index
    %c0_9 = arith.constant 0 : index
    %12 = vector.load %arg4[%c0_5, %c0_6, %c0_7, %c0_8, %c0_9] : memref<1x1x2x8x128xf32, #tpu.memory_space<vmem>>, vector<1x1x1x8x128xf32>
    %13 = vector.shape_cast %12 : vector<1x1x1x8x128xf32> to vector<8x128xf32>
    %14 = vector.shape_cast %11 : vector<8x128xf32> to vector<1x1x1x8x128xf32>
    tpu.vector_store %arg4[%c0_5, %c0_6, %c0_7, %c0_8, %c0_9], %14 {strides = array<i32>} : memref<1x1x2x8x128xf32, #tpu.memory_space<vmem>>, vector<1x1x1x8x128xf32>,
    %15 = arith.extui %4 : vector<8x128xi1> to vector<8x128xi32>
    %16 = arith.sitofp %15 : vector<8x128xi32> to vector<8x128xf32>
    %c0_10 = arith.constant 0 : index
    %c0_11 = arith.constant 0 : index
    %c1 = arith.constant 1 : index
    %c0_12 = arith.constant 0 : index
    %c0_13 = arith.constant 0 : index
    %17 = vector.load %arg4[%c0_10, %c0_11, %c1, %c0_12, %c0_13] : memref<1x1x2x8x128xf32, #tpu.memory_space<vmem>>, vector<1x1x1x8x128xf32>
    %18 = vector.shape_cast %17 : vector<1x1x1x8x128xf32> to vector<8x128xf32>
    %19 = vector.shape_cast %16 : vector<8x128xf32> to vector<1x1x1x8x128xf32>
    tpu.vector_store %arg4[%c0_10, %c0_11, %c1, %c0_12, %c0_13], %19 {strides = array<i32>} : memref<1x1x2x8x128xf32, #tpu.memory_space<vmem>>, vector<1x1x1x8x128xf32>,
    return
  }
  func.func @transform_0(%arg0: i32, %arg1: i32) -> i32 {
    %c0_i32 = arith.constant 0 : i32
    %c0_i32_0 = arith.constant 0 : i32
    return %c0_i32 : i32
  }
  func.func @transform_1(%arg0: i32, %arg1: i32) -> (i32, i32, i32) {
    %c0_i32 = arith.constant 0 : i32
    %c0_i32_0 = arith.constant 0 : i32
    return %arg0, %arg1, %c0_i32 : i32, i32, i32
  }
  func.func @transform_2(%arg0: i32, %arg1: i32) -> (i32, i32, i32, i32, i32) {
    %c0_i32 = arith.constant 0 : i32
    %c0_i32_0 = arith.constant 0 : i32
    %c0_i32_1 = arith.constant 0 : i32
    %c0_i32_2 = arith.constant 0 : i32
    return %arg0, %arg1, %c0_i32, %c0_i32_0, %c0_i32_1 : i32, i32, i32, i32, i32
  }
}

</mosaic_0001>

<bundles_post_ra>
// kernel: squeeze.27
= control target key start
LH: loop header
LB: loop body
LE: loop exit
PB: predicated region body
PF: predicated region fallthrough
CT: control target
= control target key end

     0   :  { %2 = vsyncpa [#allocation1], 0  ;;  %s160_s6 = smov [#allocation0]   ;;  %s205_s0 = inlined_call_operand.hbm [shape: f32[2,1,16,16], index: 0, kind: input, shape index: {}]   ;;  %s206_s1 = inlined_call_operand.vmem [shape: f32[2,256], index: 1, kind: output, shape index: {}]  }
   0x1   :  { %s7_s7 = sshll.u32 %s160_s6, 4  ;;  %s136_s10 = scalar_lea.hbm %s205_s0, 512  ;;  %s8_s7 = int_to_ptr.vmem [resolvable:$true] %s7_s7 }
   0x2   :  { %p137_p0 = scmp.ne.s32.totalorder %s205_s0, %s136_s10  ;;  %p140_p1 = scmp.lt.u32.totalorder %s136_s10, %s205_s0 }
   0x4   :  { %p142_p2 = pnand %p140_p1, %p137_p0 }
   0x6   :  { %145 = shalt.err (!%p142_p2)
}
   0x7   :  { %s146_s15 = scalar_lea.vmem %s8_s7, 512  ;;  %p151_p4 = scmp.lt.s32.totalorder %s8_s7, %s8_s7 }
   0x8   :  { %p147_p3 = scmp.ne.s32.totalorder %s8_s7, %s146_s15  ;;  %p152_p5 = scmp.lt.s32.totalorder %s146_s15, %s146_s15 }
   0xa   :  { %p153_p6 = por %p152_p5, %p151_p4 }
   0xc   :  { %p154_p7 = pnand %p153_p6, %p147_p3 }
   0xe   :  { %157 = shalt.err (!%p154_p7)
}
   0xf   :  { %10 = dma.hbm_to_vmem [thread:$0]  %s205_s0, 512, %s8_s7, [#allocation1]  }
  0x10   :  { %158 = dma.done.wait [#allocation1], 512  }
  0x11   :  { %159 = vsyncadd [#allocation1], 4294966784  ;;  %s18_s0 = smov 3  ;;  %s21_s18 = smov 12  ;;  %vm23_vm0 = vcmask 1043458   ;;  %vm13_vm1 = vcmask 130048  }
  0x12   :  { %s46_s19 = smov 3  ;;  %s49_s20 = smov 12  ;;  %v19_v0 = vld [vmem:[#allocation0 + $0x7] ss:$16 sm:%s18_s0]   ;;  %v22_v1 = vld [vmem:[#allocation0 - $0x11] ss:$16 sm:%s21_s18]  }
  0x13   :  { %s32_s21 = smov 3  ;;  %s35_s22 = smov 12  ;;  %v47_v2 = vld [vmem:[#allocation0 + $0x5] ss:$16 sm:%s46_s19]   ;;  %v24_v3 = vsel %vm23_vm0, %v22_v1, %v19_v0  ;;  %v50_v4 = vld [vmem:[#allocation0 - $0x13] ss:$16 sm:%s49_s20]  }
  0x14   :  { %s60_s23 = smov 3  ;;  %s63_s24 = smov 12  ;;  %v33_v5 = vld [vmem:[#allocation0 + $0x6] ss:$16 sm:%s32_s21]   ;;  %v36_v6 = vld [vmem:[#allocation0 - $0x12] ss:$16 sm:%s35_s22]   ;;  %v52_v7 = vsel %vm23_vm0, %v50_v4, %v47_v2 }
  0x15   :  { %s74_s25 = smov 3  ;;  %s77_s26 = smov 12  ;;  %v61_v8 = vld [vmem:[#allocation0 + $0x4] ss:$16 sm:%s60_s23]   ;;  %v64_v9 = vld [vmem:[#allocation0 - $0x14] ss:$16 sm:%s63_s24]   ;;  %v38_v10 = vsel %vm23_vm0, %v36_v6, %v33_v5 }
  0x16   :  { %s161_s27 = smov 112   ;;  %s162_s28 = smov 80   ;;  %v66_v11 = vsel %vm23_vm0, %v64_v9, %v61_v8  ;;  %v75_v12 = vld [vmem:[#allocation0 + $0x3] ss:$16 sm:%s74_s25]   ;;  %v78_v13 = vld [vmem:[#allocation0 - $0x15] ss:$16 sm:%s77_s26]  }
  0x17   :  { %25 = vrot.lane.b32.xlu0 %v24_v3, %s161_s27  ;;  %53 = vrot.lane.b32.xlu1 %v52_v7, %s162_s28  ;;  %s88_s29 = smov 3  ;;  %s91_s30 = smov 12  ;;  %v80_v16 = vsel %vm23_vm0, %v78_v13, %v75_v12  ;;  %v12_v17 = vld [vmem:[#allocation0] ss:$8 sm:$0xf]   ;;  %vm27_vm2 = vcmask 1048448  }
  0x18   :  { %v89_v14 = vld [vmem:[#allocation0 + $0x2] ss:$16 sm:%s88_s29]   ;;  %v92_v15 = vld [vmem:[#allocation0 - $0x16] ss:$16 sm:%s91_s30]   ;;  %s102_s2 = smov 3  ;;  %s105_s3 = smov 12 }
  0x19   :  { %s163_s4 = smov 96   ;;  %s164_s5 = smov 64   ;;  %v94_v18 = vsel %vm23_vm0, %v92_v15, %v89_v14  ;;  %v103_v19 = vld [vmem:[#allocation0 + $0x1] ss:$16 sm:%s102_s2]   ;;  %v106_v20 = vld [vmem:[#allocation0 - $0x17] ss:$16 sm:%s105_s3]  }
  0x1a   :  { %14 = vst.msk [vmem:[#allocation2] ss:$8 sm:$0x3] %vm13_vm1, %v12_v17   ;;  %16 = vst.msk [vmem:[#allocation2 - $0xf] ss:$8 sm:$0xc] %vm13_vm1, %v12_v17   ;;  %v108_v21 = vsel %vm23_vm0, %v106_v20, %v103_v19 }
  0x1b   :  { %39 = vrot.lane.b32.xlu0 %v38_v10, %s163_s4  ;;  %67 = vrot.lane.b32.xlu1 %v66_v11, %s164_s5  ;;  %s165_s6 = smov 48   ;;  %s166_s7 = smov 32   ;;  %vm41_vm3 = vcmask 917248   ;;  %vm55_vm4 = vcmask 786048   ;;  %vm69_vm5 = vcmask 654848   ;;  %vm83_vm6 = vcmask 523648  }
  0x1c   :  { %s167_s8 = smov 16   ;;  %vm97_vm7 = vcmask 392448   ;;  %vm111_vm8 = vcmask 261248  }
  0x1f   :  { %81 = vrot.lane.b32.xlu0 %v80_v16, %s165_s6  ;;  %95 = vrot.lane.b32.xlu1 %v94_v18, %s166_s7 }
  0x23   :  { %109 = vrot.lane.b32.xlu0 %v108_v21, %s167_s8 }
  0x89   :  { %v26_v22 = vpop.permute.xlu0 %25   ;;  %v54_v23 = vpop.permute.xlu1 %53  }
  0x8a   :  { %28 = vst.msk [vmem:[#allocation2] sm:$0x3] %vm27_vm2, %v26_v22   ;;  %30 = vst.msk [vmem:[#allocation2 + $0x6] sm:$0xc] %vm27_vm2, %v26_v22  }
  0x8d   :  { %v40_v24 = vpop.permute.xlu0 %39   ;;  %v68_v25 = vpop.permute.xlu1 %67  }
  0x8e   :  { %42 = vst.msk [vmem:[#allocation2] sm:$0x3] %vm41_vm3, %v40_v24   ;;  %44 = vst.msk [vmem:[#allocation2 + $0x6] sm:$0xc] %vm41_vm3, %v40_v24  }
  0x8f   :  { %56 = vst.msk [vmem:[#allocation2] sm:$0x3] %vm55_vm4, %v54_v23   ;;  %58 = vst.msk [vmem:[#allocation2 + $0x6] sm:$0xc] %vm55_vm4, %v54_v23  }
  0x90   :  { %70 = vst.msk [vmem:[#allocation2] sm:$0x3] %vm69_vm5, %v68_v25   ;;  %72 = vst.msk [vmem:[#allocation2 + $0x6] sm:$0xc] %vm69_vm5, %v68_v25  }
  0x91   :  { %v82_v26 = vpop.permute.xlu0 %81   ;;  %v96_v27 = vpop.permute.xlu1 %95  }
  0x92   :  { %84 = vst.msk [vmem:[#allocation2] sm:$0x3] %vm83_vm6, %v82_v26   ;;  %86 = vst.msk [vmem:[#allocation2 + $0x6] sm:$0xc] %vm83_vm6, %v82_v26  }
  0x93   :  { %98 = vst.msk [vmem:[#allocation2] sm:$0x3] %vm97_vm7, %v96_v27   ;;  %100 = vst.msk [vmem:[#allocation2 + $0x6] sm:$0xc] %vm97_vm7, %v96_v27  }
  0x95   :  { %v110_v28 = vpop.permute.xlu0 %109  }
  0x96   :  { %112 = vst.msk [vmem:[#allocation2] sm:$0x3] %vm111_vm8, %v110_v28   ;;  %114 = vst.msk [vmem:[#allocation2 + $0x6] sm:$0xc] %vm111_vm8, %v110_v28  }
  0x9d   :  { %v118_v29 = vld [vmem:[#allocation2] sm:$0x3]  ;;  %v122_v30 = vld [vmem:[#allocation2 + $0x8] sm:$0x3] }
  0x9e   :  { %120 = vst [vmem:[%s206_s1] sm:$0x3] %v118_v29  ;;  %127 = vst [vmem:[%s206_s1 + $0x2] sm:$0x3] %v122_v30 }
  0x9f   :  { %126 = vsyncpa [#allocation1], 1 }

// kernel: run.2
= control target key start
LH: loop header
LB: loop body
LE: loop exit
PB: predicated region body
PF: predicated region fallthrough
CT: control target
= control target key end

     0   :  { %s446_s9 = smov 0   ;;  %s448_s10 = smov 0   ;;  %s489_s0 = inlined_call_operand.vmem [shape: f32[2,4,8,128], index: 0, kind: input, shape index: {}]   ;;  %s490_s1 = inlined_call_operand.vmem [shape: s32[2,8,128], index: 1, kind: input, shape index: {}]   ;;  %s491_s2 = inlined_call_operand.vmem [shape: f32[2,1,2,8,128], index: 2, kind: output, shape index: {}]  }
   0x1   :  { %s450_s11 = smov 0  }
   0x2 LB: > { %s24_s12 = sadd.s32 1, %s424_s10  ;;  %p356_p0 = scmp.ge.s32.totalorder %s428_s11, 1  ;;  %s428_s11 = sphi %s450_s11, %s12_s11   ;;  %s424_s10 = sphi %s448_s10, %s493_s10   ;;  %s420_s9 = sphi %s446_s9, %s492_s9  }
   0x3   : > { %p26_p1 = scmp.ge.s32.totalorder %s24_s12, 2  ;;  %p145_p2 = scmp.lt.s32.totalorder %s428_s11, 3 }
   0x5   : > { %s495_s12 = smov (%p26_p1, %s24_s12), 0  ;;  %p146_p3 = pnand %p356_p0, %p145_p2 }
   0x6   : > { %p181_p4 = scmp.lt.s32.totalorder (!%p146_p3), %s420_s9, 1  ;;  %v430_v6 = vmov (!%p146_p3), 0.0  }
   0x7   : > { %149 = sbr.rel (%p146_p3) target bundleno = 64 (0x40), region = 28 }
   0xe   : > { %s497_s9 = smov (!%p181_p4, %s420_s9), 1 }
   0xf   : > { %s369_s13 = sshll.u32 %s497_s9, 5  ;;  %s359_s14 = sshll.u32 %s497_s9, 3 }
  0x10   : > { %s188_s17 = scalar_lea.vmem %s489_s0, %s369_s13  ;;  %s195_s20 = scalar_lea.vmem %s490_s1, %s359_s14 }
  0x11   : > { %s370_s21 = sshll.u32 %s497_s9, 4  ;;  %v205_v0 = vld [vmem:[%s195_s20] sm:$0xff]  ;;  %v362_v2 = vld [vmem:[%s188_s17 + $0x8] sm:$0xff]  ;;  %v363_v4 = vld [vmem:[%s188_s17 + $0x10] sm:$0xff] }
  0x12   : > { %v206_v1 = vld [vmem:[%s188_s17] sm:$0xff]  ;;  %s473_s24 = scalar_lea.vmem %s491_s2, %s370_s21  ;;  %vm216_vm0 = vcmp.ne.s32.totalorder %v205_v0, 4294967295  ;;  %v364_v5 = vld [vmem:[%s188_s17 + $0x18] sm:$0xff] }
  0x13   : > { %v209_v3 = vmax.f32 %v206_v1, %v362_v2  ;;  %v365_v7 = vsel %vm216_vm0, 1.0, %v430_v6  ;;  %v217_v24 = vsel %vm216_vm0, %v205_v0, 0 }
  0x14   : > { %366 = vst [vmem:[%s473_s24 + $0x8] sm:$0xff] %v365_v7  ;;  %vm225_vm1 = vcmp.eq.s32.totalorder %v217_v24, 1  ;;  %vm231_vm2 = vcmp.eq.s32.totalorder %v217_v24, 2  ;;  %vm237_vm3 = vcmp.eq.s32.totalorder %v217_v24, 3 }
  0x15   : > { %v212_v8 = vmax.f32 %v209_v3, %v363_v4 }
  0x17   : > { %v215_v9 = vmax.f32 %v212_v8, %v364_v5 }
  0x19   : > { %v218_v10 = vsub.f32 %v206_v1, %v215_v9  ;;  %v221_v11 = vsub.f32 %v362_v2, %v215_v9  ;;  %v227_v12 = vsub.f32 %v363_v4, %v215_v9  ;;  %v233_v13 = vsub.f32 %v364_v5, %v215_v9 }
  0x1b   : > { %v219_v14 = vmul.f32 1.442695, %v218_v10  ;;  %v222_v15 = vmul.f32 1.442695, %v221_v11  ;;  %v228_v16 = vmul.f32 1.442695, %v227_v12  ;;  %v226_v26 = vsel %vm225_vm1, %v221_v11, %v218_v10 }
  0x1c   : > { %v234_v17 = vmul.f32 1.442695, %v233_v13  ;;  %v232_v27 = vsel %vm231_vm2, %v227_v12, %v226_v26 }
  0x1d   : > { %396 = vpow2.f32 %v219_v14  ;;  %v238_v29 = vsel %vm237_vm3, %v233_v13, %v232_v27 }
  0x1e   : > { %398 = vpow2.f32 %v222_v15 }
  0x1f   : > { %400 = vpow2.f32 %v228_v16 }
  0x20   : > { %402 = vpow2.f32 %v234_v17 }
  0x27   : > { %v397_v18 = vpop.eup %396 }
  0x28   : > { %v399_v19 = vpop.eup %398 }
  0x29   : > { %v401_v20 = vpop.eup %400  ;;  %v224_v21 = vadd.f32 %v399_v19, %v397_v18 }
  0x2a   : > { %v403_v22 = vpop.eup %402 }
  0x2b   : > { %v230_v23 = vadd.f32 %v401_v20, %v224_v21 }
  0x2d   : > { %v236_v25 = vadd.f32 %v403_v22, %v230_v23 }
  0x2f   : > { %404 = vlog2.f32 %v236_v25 }
  0x39   : > { %v405_v28 = vpop.eup %404 }
  0x3a   : > { %v240_v30 = vmul.f32 0.6931472, %v405_v28 }
  0x3c   : > { %v241_v31 = vsub.f32 %v240_v30, %v238_v29 }
  0x3e   : > { %v242_v32 = vsel %vm216_vm0, %v241_v31, 0.0 }
  0x3f   : > { %243 = vst [vmem:[%s473_s24] sm:$0xff] %v242_v32 }
  0x40 PF: > { %s12_s11 = sadd.s32 1, %s428_s11   ;;  %s492_s9 = smov %s424_s10 }
  0x41   : > { %p9_p5 = scmp.ge.s32.totalorder %s12_s11, 4   ;;  %s493_s10 = smov %s495_s12 }
  0x43   :  { %11 = sbr.rel (!%p9_p5) target bundleno = 2 (0x2), region = 65 }

// kernel: run.3
= control target key start
LH: loop header
LB: loop body
LE: loop exit
PB: predicated region body
PF: predicated region fallthrough
CT: control target
= control target key end

     0   :  { %s880_s21 = smov 0   ;;  %s882_s22 = smov 0   ;;  %s977_s0 = inlined_call_operand.vmem [shape: f32[2,4,8,128], index: 0, kind: input, shape index: {}]   ;;  %s978_s1 = inlined_call_operand.vmem [shape: s32[2,8,128], index: 1, kind: input, shape index: {}]   ;;  %s979_s2 = inlined_call_operand.vmem [shape: f32[2,8,128], index: 2, kind: input, shape index: {}]   ;;  %s980_s3 = inlined_call_operand.vmem [shape: f32[2,8,128], index: 3, kind: input, shape index: {}]   ;;  %s981_s4 = inlined_call_operand.vmem [shape: f32[2,8,128], index: 4, kind: output, shape index: {0}]   ;;  %s982_s5 = inlined_call_operand.vmem [shape: f32[2,8,128], index: 5, kind: output, shape index: {1}]   ;;  %s983_s6 = inlined_call_operand.vmem [shape: f32[2,1,12,8,128], index: 6, kind: output, shape index: {2}]  }
   0x1   :  { %s884_s23 = smov 0  }
   0x2 LB: > { %s29_s24 = sadd.s32 1, %s838_s22  ;;  %p740_p0 = scmp.ge.s32.totalorder %s842_s23, 1  ;;  %s842_s23 = sphi %s884_s23, %s17_s23   ;;  %s838_s22 = sphi %s882_s22, %s987_s22   ;;  %s834_s21 = sphi %s880_s21, %s986_s21  }
   0x3   : > { %p31_p1 = scmp.ge.s32.totalorder %s29_s24, 2  ;;  %p282_p2 = scmp.lt.s32.totalorder %s842_s23, 3 }
   0x5   : > { %s989_s24 = smov (%p31_p1, %s29_s24), 0  ;;  %p283_p3 = pnand %p740_p0, %p282_p2 }
   0x6   : > { %p354_p4 = scmp.lt.s32.totalorder (!%p283_p3), %s834_s21, 1  ;;  %v844_v8 = vmov (!%p283_p3), 0.0  }
   0x7   : > { %286 = sbr.rel (%p283_p3) target bundleno = 81 (0x51), region = 36 }
   0xe   : > { %s991_s21 = smov (!%p354_p4, %s834_s21), 1 }
   0xf   : > { %s773_s25 = sshll.u32 %s991_s21, 5  ;;  %s898_s26 = sshll.u32 %s991_s21, 3 }
  0x10   : > { %s361_s29 = scalar_lea.vmem %s977_s0, %s773_s25  ;;  %s368_s8 = scalar_lea.vmem %s978_s1, %s898_s26 }
  0x11   : > { %s375_s11 = scalar_lea.vmem %s979_s2, %s898_s26  ;;  %v911_v0 = vld [vmem:[%s368_s8] sm:$0xff]  ;;  %v749_v2 = vld [vmem:[%s361_s29 + $0x8] sm:$0xff]  ;;  %s774_s12 = smul.u32 96, %s991_s21  ;;  %v750_v4 = vld [vmem:[%s361_s29 + $0x10] sm:$0xff] }
  0x12   : > { %v407_v1 = vld [vmem:[%s361_s29] sm:$0xff]  ;;  %vm417_vm0 = vcmp.ne.s32.totalorder %v911_v0, 4294967295  ;;  %v751_v6 = vld [vmem:[%s361_s29 + $0x18] sm:$0xff]  ;;  %s382_s15 = scalar_lea.vmem %s980_s3, %s898_s26  ;;  %s389_s21 = scalar_lea.vmem %s981_s4, %s898_s26 }
  0x13   : > { %v410_v3 = vmax.f32 %v407_v1, %v749_v2  ;;  %v446_v5 = vld [vmem:[%s375_s11] sm:$0xff]  ;;  %v761_v9 = vsel %vm417_vm0, 1.0, %v844_v8  ;;  %s924_s18 = scalar_lea.vmem %s983_s6, %s774_s12  ;;  %v418_v37 = vsel %vm417_vm0, %v911_v0, 0  ;;  %s396_s28 = scalar_lea.vmem %s982_s5, %s898_s26 }
  0x14   : > { %v447_v7 = vsub.f32 0.0, %v446_v5  ;;  %v492_v11 = vld [vmem:[%s382_s15] sm:$0xff]  ;;  %762 = vst [vmem:[%s924_s18 + $0x18] sm:$0xff] %v761_v9  ;;  %v502_v13 = vand.u32 2147483647, %v446_v5  ;;  %v499_v39 = vmax.f32 %v446_v5, 0.0 }
  0x15   : > { %v413_v10 = vmax.f32 %v410_v3, %v750_v4  ;;  %vm493_vm1 = vcmp.eq.f32.partialorder %v492_v11, 1.0  ;;  %vm496_vm2 = vcmp.eq.f32.partialorder %v492_v11, 0.0  ;;  %v500_v40 = vmul.f32 %v492_v11, %v446_v5 }
  0x16   : > { %v448_v12 = vmul.f32 1.442695, %v447_v7  ;;  %v765_v15 = vsel %vm493_vm1, 1.0, %v844_v8  ;;  %v503_v16 = vsub.f32 0.0, %v502_v13  ;;  %v766_v17 = vsel %vm496_vm2, 1.0, %v844_v8 }
  0x17   : > { %v416_v14 = vmax.f32 %v413_v10, %v751_v6  ;;  %769 = vst [vmem:[%s924_s18 + $0x50] sm:$0xff] %v765_v15  ;;  %770 = vst [vmem:[%s924_s18 + $0x58] sm:$0xff] %v766_v17  ;;  %vm426_vm3 = vcmp.eq.s32.totalorder %v418_v37, 1  ;;  %v501_v44 = vsub.f32 %v499_v39, %v500_v40  ;;  %vm432_vm6 = vcmp.eq.s32.totalorder %v418_v37, 2 }
  0x18   : > { %800 = vpow2.f32 %v448_v12  ;;  %v504_v22 = vmul.f32 1.442695, %v503_v16  ;;  %vm438_vm7 = vcmp.eq.s32.totalorder %v418_v37, 3 }
  0x19   : > { %v419_v18 = vsub.f32 %v407_v1, %v416_v14  ;;  %v422_v19 = vsub.f32 %v749_v2, %v416_v14  ;;  %v428_v20 = vsub.f32 %v750_v4, %v416_v14  ;;  %v434_v21 = vsub.f32 %v751_v6, %v416_v14 }
  0x1a   : > { %802 = vpow2.f32 %v504_v22 }
  0x1b   : > { %v420_v23 = vmul.f32 1.442695, %v419_v18  ;;  %v423_v24 = vmul.f32 1.442695, %v422_v19  ;;  %v429_v25 = vmul.f32 1.442695, %v428_v20  ;;  %v427_v46 = vsel %vm426_vm3, %v422_v19, %v419_v18 }
  0x1c   : > { %v435_v26 = vmul.f32 1.442695, %v434_v21  ;;  %v433_v48 = vsel %vm432_vm6, %v428_v20, %v427_v46 }
  0x1d   : > { %804 = vpow2.f32 %v420_v23  ;;  %v439_v53 = vsel %vm438_vm7, %v434_v21, %v433_v48 }
  0x1e   : > { %806 = vpow2.f32 %v423_v24 }
  0x1f   : > { %808 = vpow2.f32 %v429_v25 }
  0x20   : > { %810 = vpow2.f32 %v435_v26 }
  0x22   : > { %v801_v27 = vpop.eup %800 }
  0x23   : > { %v450_v28 = vadd.f32 1.0, %v801_v27 }
  0x24   : > { %v803_v29 = vpop.eup %802 }
  0x25   : > { %812 = vrcp.f32 %v450_v28  ;;  %v506_v31 = vadd.f32 1.0, %v803_v29 }
  0x27   : > { %v805_v30 = vpop.eup %804  ;;  %814 = vlog2.f32 %v506_v31 }
  0x28   : > { %v807_v32 = vpop.eup %806 }
  0x29   : > { %v809_v33 = vpop.eup %808  ;;  %v425_v34 = vadd.f32 %v807_v32, %v805_v30 }
  0x2a   : > { %v811_v35 = vpop.eup %810 }
  0x2b   : > { %v431_v36 = vadd.f32 %v809_v33, %v425_v34 }
  0x2d   : > { %v437_v38 = vadd.f32 %v811_v35, %v431_v36 }
  0x2f   : > { %v813_v41 = vpop.eup %812  ;;  %816 = vlog2.f32 %v437_v38 }
  0x30   : > { %vm453_vm4 = vcmp.gt.f32.partialorder %v813_v41, 0.8 }
  0x31   : > { %vm936_vm5 = vmand %vm417_vm0, %vm453_vm4  ;;  %v815_v45 = vpop.eup %814 }
  0x32   : > { %v763_v43 = vsel %vm936_vm5, 1.0, %v844_v8  ;;  %v508_v47 = vmul.f32 0.6931472, %v815_v45 }
  0x33   : > { %764 = vst [vmem:[%s924_s18 + $0x38] sm:$0xff] %v763_v43 }
  0x34   : > { %v509_v49 = vadd.f32 %v508_v47, %v501_v44 }
  0x36   : > { %v510_v50 = vmul.f32 %v765_v15, %v509_v49  ;;  %v513_v51 = vmul.f32 %v766_v17, %v509_v49 }
  0x38   : > { %767 = vst [vmem:[%s924_s18 + $0x40] sm:$0xff] %v510_v50  ;;  %768 = vst [vmem:[%s924_s18 + $0x48] sm:$0xff] %v513_v51 }
  0x39   : > { %v817_v52 = vpop.eup %816 }
  0x3a   : > { %v441_v54 = vmul.f32 0.6931472, %v817_v52 }
  0x3c   : > { %v443_v55 = vsub.f32 %v439_v53, %v441_v54  ;;  %v442_v57 = vsub.f32 %v441_v54, %v439_v53 }
  0x3e   : > { %v444_v56 = vmul.f32 1.442695, %v443_v55 }
  0x40   : > { %818 = vpow2.f32 %v444_v56 }
  0x4a   : > { %v819_v58 = vpop.eup %818 }
  0x4b   : > { %v455_v59 = vsel %vm417_vm0, %v819_v58, 2.0  ;;  %v456_v60 = vsel %vm936_vm5, %v819_v58, 2.0 }
  0x4c   : > { %457 = vst [vmem:[%s389_s21] sm:$0xff] %v455_v59  ;;  %458 = vst [vmem:[%s396_s28] sm:$0xff] %v456_v60  ;;  %vm459_vm8 = vcmp.lt.f32.partialorder %v455_v59, 0.7  ;;  %vm466_vm9 = vcmp.le.f32.partialorder %v455_v59, 0.7  ;;  %vm471_vm10 = vcmp.lt.f32.partialorder %v456_v60, 0.7 }
  0x4d   : > { %v460_v61 = vsel %vm459_vm8, %v442_v57, 0.0  ;;  %v752_v62 = vsel %vm459_vm8, 1.0, %v844_v8  ;;  %v754_v63 = vsel %vm466_vm9, 1.0, %v844_v8  ;;  %v472_v1 = vsel %vm471_vm10, %v442_v57, 0.0 }
  0x4e   : > { %461 = vst [vmem:[%s924_s18] sm:$0xff] %v460_v61  ;;  %753 = vst [vmem:[%s924_s18 + $0x8] sm:$0xff] %v752_v62  ;;  %v757_v0 = vsel %vm471_vm10, 1.0, %v844_v8  ;;  %vm479_vm11 = vcmp.le.f32.partialorder %v456_v60, 0.7 }
  0x4f   : > { %755 = vst [vmem:[%s924_s18 + $0x10] sm:$0xff] %v754_v63  ;;  %756 = vst [vmem:[%s924_s18 + $0x20] sm:$0xff] %v472_v1  ;;  %v759_v2 = vsel %vm479_vm11, 1.0, %v844_v8 }
  0x50   : > { %758 = vst [vmem:[%s924_s18 + $0x28] sm:$0xff] %v757_v0  ;;  %760 = vst [vmem:[%s924_s18 + $0x30] sm:$0xff] %v759_v2 }
  0x51 PF: > { %s17_s23 = sadd.s32 1, %s842_s23   ;;  %s986_s21 = smov %s838_s22 }
  0x52   : > { %p14_p5 = scmp.ge.s32.totalorder %s17_s23, 4   ;;  %s987_s22 = smov %s989_s24 }
  0x54   :  { %16 = sbr.rel (!%p14_p5) target bundleno = 2 (0x2), region = 113 }

// kernel: branch_0_fun.3
= control target key start
LH: loop header
LB: loop body
LE: loop exit
PB: predicated region body
PF: predicated region fallthrough
CT: control target
= control target key end

     0   :  { %s358_s11 = smov 0   ;;  %s360_s12 = smov 0   ;;  %s388_s0 = inlined_call_operand.<no memory space> [shape: f32[1], index: 0, kind: input, shape index: {}]   ;;  %s389_s1 = inlined_call_operand.vmem [shape: f32[2,8,128], index: 1, kind: input, shape index: {}]   ;;  %s390_s2 = inlined_call_operand.vmem [shape: f32[2,1,2,8,128], index: 2, kind: output, shape index: {}]  }
   0x1   :  { %7 = sst [smem:[#allocation2]] %s388_s0  ;;  %s362_s13 = smov 0  }
   0x2 LB: > { %s25_s0 = sadd.s32 1, %s333_s12  ;;  %p279_p0 = scmp.ge.s32.totalorder %s337_s13, 1  ;;  %s337_s13 = sphi %s362_s13, %s13_s13   ;;  %s333_s12 = sphi %s360_s12, %s392_s12   ;;  %s329_s11 = sphi %s358_s11, %s391_s11  }
   0x3   : > { %p27_p1 = scmp.ge.s32.totalorder %s25_s0, 2  ;;  %p131_p2 = scmp.lt.s32.totalorder %s337_s13, 3 }
   0x5   : > { %s394_s0 = smov (%p27_p1, %s25_s0), 0  ;;  %p132_p3 = pnand %p279_p0, %p131_p2 }
   0x6   : > { %p159_p4 = scmp.lt.s32.totalorder (!%p132_p3), %s329_s11, 1  ;;  %s175_s14 = sld [smem:[#allocation2]] (!%p132_p3)  ;;  %v339_v3 = vmov (!%p132_p3), 0.0  }
   0x7   : > { %135 = sbr.rel (%p132_p3) target bundleno = 37 (0x25), region = 28 }
   0xc   : > { %v177_v1 = vstv (!%p132_p3), %s175_s14 }
   0xe   : > { %s396_s11 = smov (!%p159_p4, %s329_s11), 1 }
   0xf   : > { %s280_s15 = sshll.u32 %s396_s11, 3  ;;  %s287_s16 = sshll.u32 %s396_s11, 4 }
  0x10   : > { %s165_s19 = scalar_lea.vmem %s389_s1, %s280_s15  ;;  %s174_s22 = scalar_lea.vmem %s390_s2, %s287_s16 }
  0x11   : > { %v176_v0 = vld [vmem:[%s165_s19] sm:$0xff] }
  0x12   : > { %vm178_vm0 = vcmp.lt.f32.partialorder %v176_v0, %v177_v1  ;;  %v179_v2 = vmax.f32 %v176_v0, 1e-37 }
  0x13   : > { %v283_v4 = vsel %vm178_vm0, 1.0, %v339_v3 }
  0x14   : > { %313 = vlog2.f32 %v179_v2  ;;  %284 = vst [vmem:[%s174_s22 + $0x8] sm:$0xff] %v283_v4 }
  0x1e   : > { %v314_v5 = vpop.eup %313 }
  0x1f   : > { %v181_v6 = vmul.f32 0.6931472, %v314_v5 }
  0x21   : > { %v182_v7 = vsub.f32 0.0, %v181_v6 }
  0x23   : > { %v183_v8 = vsel %vm178_vm0, %v182_v7, 0.0 }
  0x24   : > { %184 = vst [vmem:[%s174_s22] sm:$0xff] %v183_v8 }
  0x25 PF: > { %s13_s13 = sadd.s32 1, %s337_s13   ;;  %s391_s11 = smov %s333_s12 }
  0x26   : > { %p10_p5 = scmp.ge.s32.totalorder %s13_s13, 4   ;;  %s392_s12 = smov %s394_s0 }
  0x28   :  { %12 = sbr.rel (!%p10_p5) target bundleno = 2 (0x2), region = 59 }

</bundles_post_ra>
